<compile_context>
chip_gen: v6e
topology: v6e:2x2x1
jax: 0.10.0
libtpu: 0.0.40
codegen_flags: <defaults>
</compile_context>

<pallas_src>
import functools

import jax
import jax.numpy as jnp
from jax import lax
from jax.experimental import pallas as pl
from jax.experimental.pallas import tpu as pltpu


_TAPS = tuple((di, dj) for di in (-1, 0, 1) for dj in (-1, 0, 1))
_NEG_BIG = 1e30  # finite stand-in for -inf padding in the max-pool


def _skip_attention_kernel(x1_ref, x2_ref, wfc_ref, bfc_ref, wdw_ref,
                           scale_ref, shift_ref, masks_ref, out_ref, *, W):
    """Refs: x1/x2/out (bb, C, P) with P = H*W on the lane dim;
    wfc/wdw (9, C, 1) tap-major; bfc (1,) in SMEM; scale/shift (C, 1);
    masks (9, 1, P) float {0,1} validity of each 3x3 tap."""
    bb, C, P = x1_ref.shape

    x1 = x1_ref[...]                      # (bb, C, P) f32
    x2 = x2_ref[...]                      # (bb, C, P) f32

    def tap(arr, t, *, neg_fill=False):
        # arr[..., p] -> arr[..., p + di*W + dj]; outside the image the value
        # is 0 (convs) or -_NEG_BIG (max-pool) via the precomputed mask.
        di, dj = _TAPS[t]
        off = di * W + dj
        if off == 0:
            return arr
        rolled = pltpu.roll(arr, shift=(-off) % P, axis=arr.ndim - 1)
        m = masks_ref[t]                  # (1, P) in {0., 1.}
        out = rolled * m                  # exact zero padding for the convs
        if neg_fill:
            out = out + (m - 1.0) * _NEG_BIG
        return out

    # ---- fc conv: Conv2d(C -> 1, 3x3, stride 1, pad 1) + bias ---------------
    # Accumulate all 9 taps channel-wise, then ONE cross-sublane reduction.
    acc = None
    for t in range(9):
        contrib = tap(x1, t) * wfc_ref[t]             # (bb,C,P) * (C,1)
        acc = contrib if acc is None else acc + contrib
    feat = jnp.sum(acc, axis=1, keepdims=True) + bfc_ref[0]   # (bb, 1, P)

    # ---- MaxPool2d(kernel=3, stride=1, pad=1), pad value ~ -inf --------------
    mp = feat
    for t in range(9):
        if _TAPS[t] != (0, 0):
            mp = jnp.maximum(mp, tap(feat, t, neg_fill=True))

    # ---- LeakyReLU(0.2) then Sigmoid (EUP exp + approx reciprocal) -----------
    a = jnp.where(mp >= 0, mp, 0.2 * mp)
    gate = pl.reciprocal(1.0 + jnp.exp(-a), approx=True)      # (bb, 1, P)

    # ---- attention gating (broadcast over channels) ---------------------------
    xg = gate * x2                                            # (bb, C, P)

    # ---- depthwise Conv2d(C -> C, 3x3, pad 1, groups=C, no bias) -------------
    y = None
    for t in range(9):
        contrib = tap(xg, t) * wdw_ref[t]
        y = contrib if y is None else y + contrib

    # ---- BatchNorm2d (inference: folded scale/shift) + LeakyReLU(0.2) --------
    y = y * scale_ref[...] + shift_ref[...]                   # (C,1) broadcasts
    out_ref[...] = jnp.where(y >= 0, y, 0.2 * y).astype(out_ref.dtype)


def skip_attention(x1, x2, wfc, bfc, wdw, scale, shift, *, images_per_block=None):
    """x1, x2: (B, C, H, W) float32 (NCHW, as in the PyTorch module).
    wfc, wdw: (9, C) tap-major 3x3 weights (t = ki*3 + kj).
    bfc: (1,) fc-conv bias.  scale, shift: (C,) folded BatchNorm params.
    Returns (B, C, H, W)."""
    B, C, H, W = x1.shape
    P = H * W

    # Lane-dense layout: all pixels on the lane dim.
    x1f = x1.reshape(B, C, P)
    x2f = x2.reshape(B, C, P)
    wfc3 = wfc.reshape(9, C, 1)
    wdw3 = wdw.reshape(9, C, 1)
    scale2 = scale.reshape(C, 1)
    shift2 = shift.reshape(C, 1)
    bfc1 = bfc.reshape(1)

    # Precompute {0,1} validity masks for the 9 taps of the 3x3 windows.
    p = jnp.arange(P, dtype=jnp.int32)
    hh, ww = p // W, p % W
    masks = jnp.stack([
        (jnp.logical_and(jnp.logical_and(hh + di >= 0, hh + di < H),
                         jnp.logical_and(ww + dj >= 0, ww + dj < W))
         ).astype(jnp.float32)
        for (di, dj) in _TAPS
    ]).reshape(9, 1, P)

    if images_per_block is None:
        # Tiny images: fold the whole batch into one grid step (per-step
        # pipeline overhead dominates otherwise).  Large images: one image per
        # parallel step (bounds VMEM on v7x and uses both its TensorCores).
        images_per_block = B if B * C * P * 4 <= (256 << 10) else 1
    if B % images_per_block != 0:
        images_per_block = 1
    bb = images_per_block
    nb = B // bb

    kernel = functools.partial(_skip_attention_kernel, W=W)
    out = pl.pallas_call(
        kernel,
        out_shape=jax.ShapeDtypeStruct((B, C, P), x1.dtype),
        grid_spec=pltpu.PrefetchScalarGridSpec(
            num_scalar_prefetch=0,
            grid=(nb,),
            in_specs=[
                pl.BlockSpec((bb, C, P), lambda b: (b, 0, 0)),      # x1
                pl.BlockSpec((bb, C, P), lambda b: (b, 0, 0)),      # x2
                pl.BlockSpec((9, C, 1), lambda b: (0, 0, 0)),       # fc weight
                pl.BlockSpec(memory_space=pltpu.MemorySpace.SMEM),  # fc bias
                pl.BlockSpec((9, C, 1), lambda b: (0, 0, 0)),       # dw weight
                pl.BlockSpec((C, 1), lambda b: (0, 0)),             # BN scale
                pl.BlockSpec((C, 1), lambda b: (0, 0)),             # BN shift
                pl.BlockSpec((9, 1, P), lambda b: (0, 0, 0)),       # tap masks
            ],
            out_specs=pl.BlockSpec((bb, C, P), lambda b: (b, 0, 0)),
        ),
        compiler_params=pltpu.CompilerParams(
            dimension_semantics=("parallel",)),
    )(x1f, x2f, wfc3, bfc1, wdw3, scale2, shift2, masks)
    return out.reshape(B, C, H, W)


def reference_nchw(x1, x2, wfc_oihw, bfc, wdw_oihw, gamma, beta, mean, var, eps):
    """Pure-JAX reference (NCHW) mirroring the PyTorch module in eval mode."""
    dn = ('NCHW', 'OIHW', 'NCHW')
    C = x2.shape[1]
    feat = lax.conv_general_dilated(x1, wfc_oihw, (1, 1), 'SAME',
                                    dimension_numbers=dn) + bfc.reshape(1, 1, 1, 1)
    mp = lax.reduce_window(feat, -jnp.inf, lax.max,
                           (1, 1, 3, 3), (1, 1, 1, 1), 'SAME')
    a = jnp.where(mp >= 0, mp, 0.2 * mp)
    gate = 1.0 / (1.0 + jnp.exp(-a))
    x = gate * x2
    y = lax.conv_general_dilated(x, wdw_oihw, (1, 1), 'SAME',
                                 dimension_numbers=dn, feature_group_count=C)
    y = ((y - mean.reshape(1, C, 1, 1)) / jnp.sqrt(var.reshape(1, C, 1, 1) + eps)
         * gamma.reshape(1, C, 1, 1) + beta.reshape(1, C, 1, 1))
    return jnp.where(y >= 0, y, 0.2 * y)


if __name__ == "__main__":
    B, C, H, W = 2, 4, 16, 16
    eps = 1e-5

    key = jax.random.PRNGKey(0)
    ks = jax.random.split(key, 9)

    # Inputs (NCHW, matching the PyTorch module): (2, 4, 16, 16).
    x1 = jax.random.normal(ks[0], (B, C, H, W), jnp.float32)
    x2 = jax.random.normal(ks[1], (B, C, H, W), jnp.float32)

    # Parameters (deterministic, synthetic), in PyTorch layouts.
    wfc_oihw = jax.random.normal(ks[2], (1, C, 3, 3), jnp.float32) * 0.3   # Conv2d(C,1,3)
    bfc = jax.random.normal(ks[3], (1,), jnp.float32) * 0.1
    wdw_oihw = jax.random.normal(ks[4], (C, 1, 3, 3), jnp.float32) * 0.3   # depthwise
    gamma = 1.0 + 0.1 * jax.random.normal(ks[5], (C,), jnp.float32)        # BN weight
    beta = 0.1 * jax.random.normal(ks[6], (C,), jnp.float32)               # BN bias
    run_mean = 0.1 * jax.random.normal(ks[7], (C,), jnp.float32)           # BN running_mean
    run_var = jnp.abs(jax.random.normal(ks[8], (C,), jnp.float32)) + 0.5   # BN running_var

    # Kernel-layout parameters: tap-major weights + folded BN.
    wfc_tap = jnp.transpose(wfc_oihw[0], (1, 2, 0)).reshape(9, C)     # (ki*3+kj, C)
    wdw_tap = jnp.transpose(wdw_oihw[:, 0], (1, 2, 0)).reshape(9, C)
    scale = gamma / jnp.sqrt(run_var + eps)
    shift = beta - run_mean * scale

    out = skip_attention(x1, x2, wfc_tap, bfc, wdw_tap, scale, shift)
    out = jax.block_until_ready(out)

    ref = reference_nchw(x1, x2, wfc_oihw, bfc, wdw_oihw,
                         gamma, beta, run_mean, run_var, eps)
    err = float(jnp.max(jnp.abs(out - ref)))
    # Tolerance accounts for the EUP approximate reciprocal used in the
    # kernel's sigmoid (error propagated through the depthwise conv + BN).
    assert err < 1e-2, f"max abs err {err}"
    print("KERNEL_OK")
</pallas_src>

<mosaic_0001>
module attributes {stable_mosaic.version = 11 : i64} {
  func.func @_skip_attention_kernel(%arg0: i32, %arg1: memref<2x4x256xf32, #tpu.memory_space<vmem>>, %arg2: memref<2x4x256xf32, #tpu.memory_space<vmem>>, %arg3: memref<9x4x1xf32, #tpu.memory_space<vmem>>, %arg4: memref<1xf32, #tpu.memory_space<smem>>, %arg5: memref<9x4x1xf32, #tpu.memory_space<vmem>>, %arg6: memref<4x1xf32, #tpu.memory_space<vmem>>, %arg7: memref<4x1xf32, #tpu.memory_space<vmem>>, %arg8: memref<9x1x256xf32, #tpu.memory_space<vmem>>, %arg9: memref<2x4x256xf32, #tpu.memory_space<vmem>>) attributes {dimension_semantics = [#tpu.dimension_semantics<parallel>], iteration_bounds = array<i64: 1>, scalar_prefetch = 0 : i64, scratch_operands = 0 : i64, tpu.core_type = #tpu.core_type<tc>, window_params = [{transform_indices = @transform_0, window_bounds = array<i64: 2, 4, 256>}, {transform_indices = @transform_1, window_bounds = array<i64: 2, 4, 256>}, {pipeline_mode = #tpu.pipeline_mode<synchronous>, transform_indices = @transform_2, window_bounds = array<i64: 9, 4, 1>}, {transform_indices = @transform_3, window_bounds = array<i64: 1>}, {pipeline_mode = #tpu.pipeline_mode<synchronous>, transform_indices = @transform_4, window_bounds = array<i64: 9, 4, 1>}, {pipeline_mode = #tpu.pipeline_mode<synchronous>, transform_indices = @transform_5, window_bounds = array<i64: 4, 1>}, {pipeline_mode = #tpu.pipeline_mode<synchronous>, transform_indices = @transform_6, window_bounds = array<i64: 4, 1>}, {pipeline_mode = #tpu.pipeline_mode<synchronous>, transform_indices = @transform_7, window_bounds = array<i64: 9, 1, 256>}, {transform_indices = @transform_8, window_bounds = array<i64: 2, 4, 256>}]} {
    %c0 = arith.constant 0 : index
    %c0_0 = arith.constant 0 : index
    %c0_1 = arith.constant 0 : index
    %0 = vector.load %arg1[%c0, %c0_0, %c0_1] : memref<2x4x256xf32, #tpu.memory_space<vmem>>, vector<2x4x256xf32>
    %c0_2 = arith.constant 0 : index
    %c0_3 = arith.constant 0 : index
    %c0_4 = arith.constant 0 : index
    %1 = vector.load %arg2[%c0_2, %c0_3, %c0_4] : memref<2x4x256xf32, #tpu.memory_space<vmem>>, vector<2x4x256xf32>
    %c17_i32 = arith.constant 17 : i32
    %2 = tpu.dynamic_rotate %0 by %c17_i32 dim 2 : vector<2x4x256xf32>, i32 -> vector<2x4x256xf32>
    %c0_5 = arith.constant 0 : index
    %c0_6 = arith.constant 0 : index
    %c0_7 = arith.constant 0 : index
    %3 = vector.load %arg8[%c0_5, %c0_6, %c0_7] : memref<9x1x256xf32, #tpu.memory_space<vmem>>, vector<1x1x256xf32>
    %4 = vector.shape_cast %3 : vector<1x1x256xf32> to vector<1x256xf32>
    %5 = vector.shape_cast %4 : vector<1x256xf32> to vector<1x1x256xf32>
    %6 = vector.broadcast %5 : vector<1x1x256xf32> to vector<2x4x256xf32>
    %7 = arith.mulf %2, %6 : vector<2x4x256xf32>
    %c0_8 = arith.constant 0 : index
    %c0_9 = arith.constant 0 : index
    %c0_10 = arith.constant 0 : index
    %8 = vector.load %arg3[%c0_8, %c0_9, %c0_10] : memref<9x4x1xf32, #tpu.memory_space<vmem>>, vector<1x4x1xf32>
    %9 = vector.shape_cast %8 : vector<1x4x1xf32> to vector<4x1xf32>
    %10 = vector.shape_cast %9 : vector<4x1xf32> to vector<1x4x1xf32>
    %11 = vector.broadcast %10 : vector<1x4x1xf32> to vector<2x4x256xf32>
    %12 = arith.mulf %7, %11 : vector<2x4x256xf32>
    %c16_i32 = arith.constant 16 : i32
    %13 = tpu.dynamic_rotate %0 by %c16_i32 dim 2 : vector<2x4x256xf32>, i32 -> vector<2x4x256xf32>
    %c1 = arith.constant 1 : index
    %c0_11 = arith.constant 0 : index
    %c0_12 = arith.constant 0 : index
    %14 = vector.load %arg8[%c1, %c0_11, %c0_12] : memref<9x1x256xf32, #tpu.memory_space<vmem>>, vector<1x1x256xf32>
    %15 = vector.shape_cast %14 : vector<1x1x256xf32> to vector<1x256xf32>
    %16 = vector.shape_cast %15 : vector<1x256xf32> to vector<1x1x256xf32>
    %17 = vector.broadcast %16 : vector<1x1x256xf32> to vector<2x4x256xf32>
    %18 = arith.mulf %13, %17 : vector<2x4x256xf32>
    %c1_13 = arith.constant 1 : index
    %c0_14 = arith.constant 0 : index
    %c0_15 = arith.constant 0 : index
    %19 = vector.load %arg3[%c1_13, %c0_14, %c0_15] : memref<9x4x1xf32, #tpu.memory_space<vmem>>, vector<1x4x1xf32>
    %20 = vector.shape_cast %19 : vector<1x4x1xf32> to vector<4x1xf32>
    %21 = vector.shape_cast %20 : vector<4x1xf32> to vector<1x4x1xf32>
    %22 = vector.broadcast %21 : vector<1x4x1xf32> to vector<2x4x256xf32>
    %23 = arith.mulf %18, %22 : vector<2x4x256xf32>
    %24 = arith.addf %12, %23 : vector<2x4x256xf32>
    %c15_i32 = arith.constant 15 : i32
    %25 = tpu.dynamic_rotate %0 by %c15_i32 dim 2 : vector<2x4x256xf32>, i32 -> vector<2x4x256xf32>
    %c2 = arith.constant 2 : index
    %c0_16 = arith.constant 0 : index
    %c0_17 = arith.constant 0 : index
    %26 = vector.load %arg8[%c2, %c0_16, %c0_17] : memref<9x1x256xf32, #tpu.memory_space<vmem>>, vector<1x1x256xf32>
    %27 = vector.shape_cast %26 : vector<1x1x256xf32> to vector<1x256xf32>
    %28 = vector.shape_cast %27 : vector<1x256xf32> to vector<1x1x256xf32>
    %29 = vector.broadcast %28 : vector<1x1x256xf32> to vector<2x4x256xf32>
    %30 = arith.mulf %25, %29 : vector<2x4x256xf32>
    %c2_18 = arith.constant 2 : index
    %c0_19 = arith.constant 0 : index
    %c0_20 = arith.constant 0 : index
    %31 = vector.load %arg3[%c2_18, %c0_19, %c0_20] : memref<9x4x1xf32, #tpu.memory_space<vmem>>, vector<1x4x1xf32>
    %32 = vector.shape_cast %31 : vector<1x4x1xf32> to vector<4x1xf32>
    %33 = vector.shape_cast %32 : vector<4x1xf32> to vector<1x4x1xf32>
    %34 = vector.broadcast %33 : vector<1x4x1xf32> to vector<2x4x256xf32>
    %35 = arith.mulf %30, %34 : vector<2x4x256xf32>
    %36 = arith.addf %24, %35 : vector<2x4x256xf32>
    %c1_i32 = arith.constant 1 : i32
    %37 = tpu.dynamic_rotate %0 by %c1_i32 dim 2 : vector<2x4x256xf32>, i32 -> vector<2x4x256xf32>
    %c3 = arith.constant 3 : index
    %c0_21 = arith.constant 0 : index
    %c0_22 = arith.constant 0 : index
    %38 = vector.load %arg8[%c3, %c0_21, %c0_22] : memref<9x1x256xf32, #tpu.memory_space<vmem>>, vector<1x1x256xf32>
    %39 = vector.shape_cast %38 : vector<1x1x256xf32> to vector<1x256xf32>
    %40 = vector.shape_cast %39 : vector<1x256xf32> to vector<1x1x256xf32>
    %41 = vector.broadcast %40 : vector<1x1x256xf32> to vector<2x4x256xf32>
    %42 = arith.mulf %37, %41 : vector<2x4x256xf32>
    %c3_23 = arith.constant 3 : index
    %c0_24 = arith.constant 0 : index
    %c0_25 = arith.constant 0 : index
    %43 = vector.load %arg3[%c3_23, %c0_24, %c0_25] : memref<9x4x1xf32, #tpu.memory_space<vmem>>, vector<1x4x1xf32>
    %44 = vector.shape_cast %43 : vector<1x4x1xf32> to vector<4x1xf32>
    %45 = vector.shape_cast %44 : vector<4x1xf32> to vector<1x4x1xf32>
    %46 = vector.broadcast %45 : vector<1x4x1xf32> to vector<2x4x256xf32>
    %47 = arith.mulf %42, %46 : vector<2x4x256xf32>
    %48 = arith.addf %36, %47 : vector<2x4x256xf32>
    %c4 = arith.constant 4 : index
    %c0_26 = arith.constant 0 : index
    %c0_27 = arith.constant 0 : index
    %49 = vector.load %arg3[%c4, %c0_26, %c0_27] : memref<9x4x1xf32, #tpu.memory_space<vmem>>, vector<1x4x1xf32>
    %50 = vector.shape_cast %49 : vector<1x4x1xf32> to vector<4x1xf32>
    %51 = vector.shape_cast %50 : vector<4x1xf32> to vector<1x4x1xf32>
    %52 = vector.broadcast %51 : vector<1x4x1xf32> to vector<2x4x256xf32>
    %53 = arith.mulf %0, %52 : vector<2x4x256xf32>
    %54 = arith.addf %48, %53 : vector<2x4x256xf32>
    %c255_i32 = arith.constant 255 : i32
    %55 = tpu.dynamic_rotate %0 by %c255_i32 dim 2 : vector<2x4x256xf32>, i32 -> vector<2x4x256xf32>
    %c5 = arith.constant 5 : index
    %c0_28 = arith.constant 0 : index
    %c0_29 = arith.constant 0 : index
    %56 = vector.load %arg8[%c5, %c0_28, %c0_29] : memref<9x1x256xf32, #tpu.memory_space<vmem>>, vector<1x1x256xf32>
    %57 = vector.shape_cast %56 : vector<1x1x256xf32> to vector<1x256xf32>
    %58 = vector.shape_cast %57 : vector<1x256xf32> to vector<1x1x256xf32>
    %59 = vector.broadcast %58 : vector<1x1x256xf32> to vector<2x4x256xf32>
    %60 = arith.mulf %55, %59 : vector<2x4x256xf32>
    %c5_30 = arith.constant 5 : index
    %c0_31 = arith.constant 0 : index
    %c0_32 = arith.constant 0 : index
    %61 = vector.load %arg3[%c5_30, %c0_31, %c0_32] : memref<9x4x1xf32, #tpu.memory_space<vmem>>, vector<1x4x1xf32>
    %62 = vector.shape_cast %61 : vector<1x4x1xf32> to vector<4x1xf32>
    %63 = vector.shape_cast %62 : vector<4x1xf32> to vector<1x4x1xf32>
    %64 = vector.broadcast %63 : vector<1x4x1xf32> to vector<2x4x256xf32>
    %65 = arith.mulf %60, %64 : vector<2x4x256xf32>
    %66 = arith.addf %54, %65 : vector<2x4x256xf32>
    %c241_i32 = arith.constant 241 : i32
    %67 = tpu.dynamic_rotate %0 by %c241_i32 dim 2 : vector<2x4x256xf32>, i32 -> vector<2x4x256xf32>
    %c6 = arith.constant 6 : index
    %c0_33 = arith.constant 0 : index
    %c0_34 = arith.constant 0 : index
    %68 = vector.load %arg8[%c6, %c0_33, %c0_34] : memref<9x1x256xf32, #tpu.memory_space<vmem>>, vector<1x1x256xf32>
    %69 = vector.shape_cast %68 : vector<1x1x256xf32> to vector<1x256xf32>
    %70 = vector.shape_cast %69 : vector<1x256xf32> to vector<1x1x256xf32>
    %71 = vector.broadcast %70 : vector<1x1x256xf32> to vector<2x4x256xf32>
    %72 = arith.mulf %67, %71 : vector<2x4x256xf32>
    %c6_35 = arith.constant 6 : index
    %c0_36 = arith.constant 0 : index
    %c0_37 = arith.constant 0 : index
    %73 = vector.load %arg3[%c6_35, %c0_36, %c0_37] : memref<9x4x1xf32, #tpu.memory_space<vmem>>, vector<1x4x1xf32>
    %74 = vector.shape_cast %73 : vector<1x4x1xf32> to vector<4x1xf32>
    %75 = vector.shape_cast %74 : vector<4x1xf32> to vector<1x4x1xf32>
    %76 = vector.broadcast %75 : vector<1x4x1xf32> to vector<2x4x256xf32>
    %77 = arith.mulf %72, %76 : vector<2x4x256xf32>
    %78 = arith.addf %66, %77 : vector<2x4x256xf32>
    %c240_i32 = arith.constant 240 : i32
    %79 = tpu.dynamic_rotate %0 by %c240_i32 dim 2 : vector<2x4x256xf32>, i32 -> vector<2x4x256xf32>
    %c7 = arith.constant 7 : index
    %c0_38 = arith.constant 0 : index
    %c0_39 = arith.constant 0 : index
    %80 = vector.load %arg8[%c7, %c0_38, %c0_39] : memref<9x1x256xf32, #tpu.memory_space<vmem>>, vector<1x1x256xf32>
    %81 = vector.shape_cast %80 : vector<1x1x256xf32> to vector<1x256xf32>
    %82 = vector.shape_cast %81 : vector<1x256xf32> to vector<1x1x256xf32>
    %83 = vector.broadcast %82 : vector<1x1x256xf32> to vector<2x4x256xf32>
    %84 = arith.mulf %79, %83 : vector<2x4x256xf32>
    %c7_40 = arith.constant 7 : index
    %c0_41 = arith.constant 0 : index
    %c0_42 = arith.constant 0 : index
    %85 = vector.load %arg3[%c7_40, %c0_41, %c0_42] : memref<9x4x1xf32, #tpu.memory_space<vmem>>, vector<1x4x1xf32>
    %86 = vector.shape_cast %85 : vector<1x4x1xf32> to vector<4x1xf32>
    %87 = vector.shape_cast %86 : vector<4x1xf32> to vector<1x4x1xf32>
    %88 = vector.broadcast %87 : vector<1x4x1xf32> to vector<2x4x256xf32>
    %89 = arith.mulf %84, %88 : vector<2x4x256xf32>
    %90 = arith.addf %78, %89 : vector<2x4x256xf32>
    %c239_i32 = arith.constant 239 : i32
    %91 = tpu.dynamic_rotate %0 by %c239_i32 dim 2 : vector<2x4x256xf32>, i32 -> vector<2x4x256xf32>
    %c8 = arith.constant 8 : index
    %c0_43 = arith.constant 0 : index
    %c0_44 = arith.constant 0 : index
    %92 = vector.load %arg8[%c8, %c0_43, %c0_44] : memref<9x1x256xf32, #tpu.memory_space<vmem>>, vector<1x1x256xf32>
    %93 = vector.shape_cast %92 : vector<1x1x256xf32> to vector<1x256xf32>
    %94 = vector.shape_cast %93 : vector<1x256xf32> to vector<1x1x256xf32>
    %95 = vector.broadcast %94 : vector<1x1x256xf32> to vector<2x4x256xf32>
    %96 = arith.mulf %91, %95 : vector<2x4x256xf32>
    %c8_45 = arith.constant 8 : index
    %c0_46 = arith.constant 0 : index
    %c0_47 = arith.constant 0 : index
    %97 = vector.load %arg3[%c8_45, %c0_46, %c0_47] : memref<9x4x1xf32, #tpu.memory_space<vmem>>, vector<1x4x1xf32>
    %98 = vector.shape_cast %97 : vector<1x4x1xf32> to vector<4x1xf32>
    %99 = vector.shape_cast %98 : vector<4x1xf32> to vector<1x4x1xf32>
    %100 = vector.broadcast %99 : vector<1x4x1xf32> to vector<2x4x256xf32>
    %101 = arith.mulf %96, %100 : vector<2x4x256xf32>
    %102 = arith.addf %90, %101 : vector<2x4x256xf32>
    %cst = arith.constant dense<0.000000e+00> : vector<2x256xf32>
    %103 = vector.multi_reduction <add>, %102, %cst [1] : vector<2x4x256xf32> to vector<2x256xf32>
    %104 = vector.shape_cast %103 : vector<2x256xf32> to vector<2x1x256xf32>
    %c0_48 = arith.constant 0 : index
    %105 = memref.load %arg4[%c0_48] : memref<1xf32, #tpu.memory_space<smem>>
    %106 = vector.broadcast %105 : f32 to vector<2x1x256xf32>
    %107 = arith.addf %104, %106 : vector<2x1x256xf32>
    %c17_i32_49 = arith.constant 17 : i32
    %108 = tpu.dynamic_rotate %107 by %c17_i32_49 dim 2 : vector<2x1x256xf32>, i32 -> vector<2x1x256xf32>
    %c0_50 = arith.constant 0 : index
    %c0_51 = arith.constant 0 : index
    %c0_52 = arith.constant 0 : index
    %109 = vector.load %arg8[%c0_50, %c0_51, %c0_52] : memref<9x1x256xf32, #tpu.memory_space<vmem>>, vector<1x1x256xf32>
    %110 = vector.shape_cast %109 : vector<1x1x256xf32> to vector<1x256xf32>
    %111 = vector.shape_cast %110 : vector<1x256xf32> to vector<1x1x256xf32>
    %112 = vector.broadcast %111 : vector<1x1x256xf32> to vector<2x1x256xf32>
    %113 = arith.mulf %108, %112 : vector<2x1x256xf32>
    %cst_53 = arith.constant 1.000000e+00 : f32
    %114 = vector.broadcast %cst_53 : f32 to vector<1x256xf32>
    %115 = arith.subf %110, %114 : vector<1x256xf32>
    %cst_54 = arith.constant 1.000000e+30 : f32
    %116 = vector.broadcast %cst_54 : f32 to vector<1x256xf32>
    %117 = arith.mulf %115, %116 : vector<1x256xf32>
    %118 = vector.shape_cast %117 : vector<1x256xf32> to vector<1x1x256xf32>
    %119 = vector.broadcast %118 : vector<1x1x256xf32> to vector<2x1x256xf32>
    %120 = arith.addf %113, %119 : vector<2x1x256xf32>
    %121 = arith.maximumf %107, %120 : vector<2x1x256xf32>
    %c16_i32_55 = arith.constant 16 : i32
    %122 = tpu.dynamic_rotate %107 by %c16_i32_55 dim 2 : vector<2x1x256xf32>, i32 -> vector<2x1x256xf32>
    %c1_56 = arith.constant 1 : index
    %c0_57 = arith.constant 0 : index
    %c0_58 = arith.constant 0 : index
    %123 = vector.load %arg8[%c1_56, %c0_57, %c0_58] : memref<9x1x256xf32, #tpu.memory_space<vmem>>, vector<1x1x256xf32>
    %124 = vector.shape_cast %123 : vector<1x1x256xf32> to vector<1x256xf32>
    %125 = vector.shape_cast %124 : vector<1x256xf32> to vector<1x1x256xf32>
    %126 = vector.broadcast %125 : vector<1x1x256xf32> to vector<2x1x256xf32>
    %127 = arith.mulf %122, %126 : vector<2x1x256xf32>
    %cst_59 = arith.constant 1.000000e+00 : f32
    %128 = vector.broadcast %cst_59 : f32 to vector<1x256xf32>
    %129 = arith.subf %124, %128 : vector<1x256xf32>
    %cst_60 = arith.constant 1.000000e+30 : f32
    %130 = vector.broadcast %cst_60 : f32 to vector<1x256xf32>
    %131 = arith.mulf %129, %130 : vector<1x256xf32>
    %132 = vector.shape_cast %131 : vector<1x256xf32> to vector<1x1x256xf32>
    %133 = vector.broadcast %132 : vector<1x1x256xf32> to vector<2x1x256xf32>
    %134 = arith.addf %127, %133 : vector<2x1x256xf32>
    %135 = arith.maximumf %121, %134 : vector<2x1x256xf32>
    %c15_i32_61 = arith.constant 15 : i32
    %136 = tpu.dynamic_rotate %107 by %c15_i32_61 dim 2 : vector<2x1x256xf32>, i32 -> vector<2x1x256xf32>
    %c2_62 = arith.constant 2 : index
    %c0_63 = arith.constant 0 : index
    %c0_64 = arith.constant 0 : index
    %137 = vector.load %arg8[%c2_62, %c0_63, %c0_64] : memref<9x1x256xf32, #tpu.memory_space<vmem>>, vector<1x1x256xf32>
    %138 = vector.shape_cast %137 : vector<1x1x256xf32> to vector<1x256xf32>
    %139 = vector.shape_cast %138 : vector<1x256xf32> to vector<1x1x256xf32>
    %140 = vector.broadcast %139 : vector<1x1x256xf32> to vector<2x1x256xf32>
    %141 = arith.mulf %136, %140 : vector<2x1x256xf32>
    %cst_65 = arith.constant 1.000000e+00 : f32
    %142 = vector.broadcast %cst_65 : f32 to vector<1x256xf32>
    %143 = arith.subf %138, %142 : vector<1x256xf32>
    %cst_66 = arith.constant 1.000000e+30 : f32
    %144 = vector.broadcast %cst_66 : f32 to vector<1x256xf32>
    %145 = arith.mulf %143, %144 : vector<1x256xf32>
    %146 = vector.shape_cast %145 : vector<1x256xf32> to vector<1x1x256xf32>
    %147 = vector.broadcast %146 : vector<1x1x256xf32> to vector<2x1x256xf32>
    %148 = arith.addf %141, %147 : vector<2x1x256xf32>
    %149 = arith.maximumf %135, %148 : vector<2x1x256xf32>
    %c1_i32_67 = arith.constant 1 : i32
    %150 = tpu.dynamic_rotate %107 by %c1_i32_67 dim 2 : vector<2x1x256xf32>, i32 -> vector<2x1x256xf32>
    %c3_68 = arith.constant 3 : index
    %c0_69 = arith.constant 0 : index
    %c0_70 = arith.constant 0 : index
    %151 = vector.load %arg8[%c3_68, %c0_69, %c0_70] : memref<9x1x256xf32, #tpu.memory_space<vmem>>, vector<1x1x256xf32>
    %152 = vector.shape_cast %151 : vector<1x1x256xf32> to vector<1x256xf32>
    %153 = vector.shape_cast %152 : vector<1x256xf32> to vector<1x1x256xf32>
    %154 = vector.broadcast %153 : vector<1x1x256xf32> to vector<2x1x256xf32>
    %155 = arith.mulf %150, %154 : vector<2x1x256xf32>
    %cst_71 = arith.constant 1.000000e+00 : f32
    %156 = vector.broadcast %cst_71 : f32 to vector<1x256xf32>
    %157 = arith.subf %152, %156 : vector<1x256xf32>
    %cst_72 = arith.constant 1.000000e+30 : f32
    %158 = vector.broadcast %cst_72 : f32 to vector<1x256xf32>
    %159 = arith.mulf %157, %158 : vector<1x256xf32>
    %160 = vector.shape_cast %159 : vector<1x256xf32> to vector<1x1x256xf32>
    %161 = vector.broadcast %160 : vector<1x1x256xf32> to vector<2x1x256xf32>
    %162 = arith.addf %155, %161 : vector<2x1x256xf32>
    %163 = arith.maximumf %149, %162 : vector<2x1x256xf32>
    %c255_i32_73 = arith.constant 255 : i32
    %164 = tpu.dynamic_rotate %107 by %c255_i32_73 dim 2 : vector<2x1x256xf32>, i32 -> vector<2x1x256xf32>
    %c5_74 = arith.constant 5 : index
    %c0_75 = arith.constant 0 : index
    %c0_76 = arith.constant 0 : index
    %165 = vector.load %arg8[%c5_74, %c0_75, %c0_76] : memref<9x1x256xf32, #tpu.memory_space<vmem>>, vector<1x1x256xf32>
    %166 = vector.shape_cast %165 : vector<1x1x256xf32> to vector<1x256xf32>
    %167 = vector.shape_cast %166 : vector<1x256xf32> to vector<1x1x256xf32>
    %168 = vector.broadcast %167 : vector<1x1x256xf32> to vector<2x1x256xf32>
    %169 = arith.mulf %164, %168 : vector<2x1x256xf32>
    %cst_77 = arith.constant 1.000000e+00 : f32
    %170 = vector.broadcast %cst_77 : f32 to vector<1x256xf32>
    %171 = arith.subf %166, %170 : vector<1x256xf32>
    %cst_78 = arith.constant 1.000000e+30 : f32
    %172 = vector.broadcast %cst_78 : f32 to vector<1x256xf32>
    %173 = arith.mulf %171, %172 : vector<1x256xf32>
    %174 = vector.shape_cast %173 : vector<1x256xf32> to vector<1x1x256xf32>
    %175 = vector.broadcast %174 : vector<1x1x256xf32> to vector<2x1x256xf32>
    %176 = arith.addf %169, %175 : vector<2x1x256xf32>
    %177 = arith.maximumf %163, %176 : vector<2x1x256xf32>
    %c241_i32_79 = arith.constant 241 : i32
    %178 = tpu.dynamic_rotate %107 by %c241_i32_79 dim 2 : vector<2x1x256xf32>, i32 -> vector<2x1x256xf32>
    %c6_80 = arith.constant 6 : index
    %c0_81 = arith.constant 0 : index
    %c0_82 = arith.constant 0 : index
    %179 = vector.load %arg8[%c6_80, %c0_81, %c0_82] : memref<9x1x256xf32, #tpu.memory_space<vmem>>, vector<1x1x256xf32>
    %180 = vector.shape_cast %179 : vector<1x1x256xf32> to vector<1x256xf32>
    %181 = vector.shape_cast %180 : vector<1x256xf32> to vector<1x1x256xf32>
    %182 = vector.broadcast %181 : vector<1x1x256xf32> to vector<2x1x256xf32>
    %183 = arith.mulf %178, %182 : vector<2x1x256xf32>
    %cst_83 = arith.constant 1.000000e+00 : f32
    %184 = vector.broadcast %cst_83 : f32 to vector<1x256xf32>
    %185 = arith.subf %180, %184 : vector<1x256xf32>
    %cst_84 = arith.constant 1.000000e+30 : f32
    %186 = vector.broadcast %cst_84 : f32 to vector<1x256xf32>
    %187 = arith.mulf %185, %186 : vector<1x256xf32>
    %188 = vector.shape_cast %187 : vector<1x256xf32> to vector<1x1x256xf32>
    %189 = vector.broadcast %188 : vector<1x1x256xf32> to vector<2x1x256xf32>
    %190 = arith.addf %183, %189 : vector<2x1x256xf32>
    %191 = arith.maximumf %177, %190 : vector<2x1x256xf32>
    %c240_i32_85 = arith.constant 240 : i32
    %192 = tpu.dynamic_rotate %107 by %c240_i32_85 dim 2 : vector<2x1x256xf32>, i32 -> vector<2x1x256xf32>
    %c7_86 = arith.constant 7 : index
    %c0_87 = arith.constant 0 : index
    %c0_88 = arith.constant 0 : index
    %193 = vector.load %arg8[%c7_86, %c0_87, %c0_88] : memref<9x1x256xf32, #tpu.memory_space<vmem>>, vector<1x1x256xf32>
    %194 = vector.shape_cast %193 : vector<1x1x256xf32> to vector<1x256xf32>
    %195 = vector.shape_cast %194 : vector<1x256xf32> to vector<1x1x256xf32>
    %196 = vector.broadcast %195 : vector<1x1x256xf32> to vector<2x1x256xf32>
    %197 = arith.mulf %192, %196 : vector<2x1x256xf32>
    %cst_89 = arith.constant 1.000000e+00 : f32
    %198 = vector.broadcast %cst_89 : f32 to vector<1x256xf32>
    %199 = arith.subf %194, %198 : vector<1x256xf32>
    %cst_90 = arith.constant 1.000000e+30 : f32
    %200 = vector.broadcast %cst_90 : f32 to vector<1x256xf32>
    %201 = arith.mulf %199, %200 : vector<1x256xf32>
    %202 = vector.shape_cast %201 : vector<1x256xf32> to vector<1x1x256xf32>
    %203 = vector.broadcast %202 : vector<1x1x256xf32> to vector<2x1x256xf32>
    %204 = arith.addf %197, %203 : vector<2x1x256xf32>
    %205 = arith.maximumf %191, %204 : vector<2x1x256xf32>
    %c239_i32_91 = arith.constant 239 : i32
    %206 = tpu.dynamic_rotate %107 by %c239_i32_91 dim 2 : vector<2x1x256xf32>, i32 -> vector<2x1x256xf32>
    %c8_92 = arith.constant 8 : index
    %c0_93 = arith.constant 0 : index
    %c0_94 = arith.constant 0 : index
    %207 = vector.load %arg8[%c8_92, %c0_93, %c0_94] : memref<9x1x256xf32, #tpu.memory_space<vmem>>, vector<1x1x256xf32>
    %208 = vector.shape_cast %207 : vector<1x1x256xf32> to vector<1x256xf32>
    %209 = vector.shape_cast %208 : vector<1x256xf32> to vector<1x1x256xf32>
    %210 = vector.broadcast %209 : vector<1x1x256xf32> to vector<2x1x256xf32>
    %211 = arith.mulf %206, %210 : vector<2x1x256xf32>
    %cst_95 = arith.constant 1.000000e+00 : f32
    %212 = vector.broadcast %cst_95 : f32 to vector<1x256xf32>
    %213 = arith.subf %208, %212 : vector<1x256xf32>
    %cst_96 = arith.constant 1.000000e+30 : f32
    %214 = vector.broadcast %cst_96 : f32 to vector<1x256xf32>
    %215 = arith.mulf %213, %214 : vector<1x256xf32>
    %216 = vector.shape_cast %215 : vector<1x256xf32> to vector<1x1x256xf32>
    %217 = vector.broadcast %216 : vector<1x1x256xf32> to vector<2x1x256xf32>
    %218 = arith.addf %211, %217 : vector<2x1x256xf32>
    %219 = arith.maximumf %205, %218 : vector<2x1x256xf32>
    %cst_97 = arith.constant 0.000000e+00 : f32
    %220 = vector.broadcast %cst_97 : f32 to vector<2x1x256xf32>
    %221 = arith.cmpf oge, %219, %220 : vector<2x1x256xf32>
    %cst_98 = arith.constant 2.000000e-01 : f32
    %222 = vector.broadcast %cst_98 : f32 to vector<2x1x256xf32>
    %223 = arith.mulf %222, %219 : vector<2x1x256xf32>
    %224 = arith.select %221, %219, %223 : vector<2x1x256xi1>, vector<2x1x256xf32>
    %cst_99 = arith.constant 0.000000e+00 : f32
    %225 = vector.broadcast %cst_99 : f32 to vector<2x1x256xf32>
    %226 = arith.subf %225, %224 : vector<2x1x256xf32>
    %227 = math.exp %226 : vector<2x1x256xf32>
    %cst_100 = arith.constant 1.000000e+00 : f32
    %228 = vector.broadcast %cst_100 : f32 to vector<2x1x256xf32>
    %229 = arith.addf %228, %227 : vector<2x1x256xf32>
    %230 = tpu.reciprocal %229 {approx = true} : vector<2x1x256xf32> -> vector<2x1x256xf32>
    %231 = vector.broadcast %230 : vector<2x1x256xf32> to vector<2x4x256xf32>
    %232 = arith.mulf %231, %1 : vector<2x4x256xf32>
    %c17_i32_101 = arith.constant 17 : i32
    %233 = tpu.dynamic_rotate %232 by %c17_i32_101 dim 2 : vector<2x4x256xf32>, i32 -> vector<2x4x256xf32>
    %c0_102 = arith.constant 0 : index
    %c0_103 = arith.constant 0 : index
    %c0_104 = arith.constant 0 : index
    %234 = vector.load %arg8[%c0_102, %c0_103, %c0_104] : memref<9x1x256xf32, #tpu.memory_space<vmem>>, vector<1x1x256xf32>
    %235 = vector.shape_cast %234 : vector<1x1x256xf32> to vector<1x256xf32>
    %236 = vector.shape_cast %235 : vector<1x256xf32> to vector<1x1x256xf32>
    %237 = vector.broadcast %236 : vector<1x1x256xf32> to vector<2x4x256xf32>
    %238 = arith.mulf %233, %237 : vector<2x4x256xf32>
    %c0_105 = arith.constant 0 : index
    %c0_106 = arith.constant 0 : index
    %c0_107 = arith.constant 0 : index
    %239 = vector.load %arg5[%c0_105, %c0_106, %c0_107] : memref<9x4x1xf32, #tpu.memory_space<vmem>>, vector<1x4x1xf32>
    %240 = vector.shape_cast %239 : vector<1x4x1xf32> to vector<4x1xf32>
    %241 = vector.shape_cast %240 : vector<4x1xf32> to vector<1x4x1xf32>
    %242 = vector.broadcast %241 : vector<1x4x1xf32> to vector<2x4x256xf32>
    %243 = arith.mulf %238, %242 : vector<2x4x256xf32>
    %c16_i32_108 = arith.constant 16 : i32
    %244 = tpu.dynamic_rotate %232 by %c16_i32_108 dim 2 : vector<2x4x256xf32>, i32 -> vector<2x4x256xf32>
    %c1_109 = arith.constant 1 : index
    %c0_110 = arith.constant 0 : index
    %c0_111 = arith.constant 0 : index
    %245 = vector.load %arg8[%c1_109, %c0_110, %c0_111] : memref<9x1x256xf32, #tpu.memory_space<vmem>>, vector<1x1x256xf32>
    %246 = vector.shape_cast %245 : vector<1x1x256xf32> to vector<1x256xf32>
    %247 = vector.shape_cast %246 : vector<1x256xf32> to vector<1x1x256xf32>
    %248 = vector.broadcast %247 : vector<1x1x256xf32> to vector<2x4x256xf32>
    %249 = arith.mulf %244, %248 : vector<2x4x256xf32>
    %c1_112 = arith.constant 1 : index
    %c0_113 = arith.constant 0 : index
    %c0_114 = arith.constant 0 : index
    %250 = vector.load %arg5[%c1_112, %c0_113, %c0_114] : memref<9x4x1xf32, #tpu.memory_space<vmem>>, vector<1x4x1xf32>
    %251 = vector.shape_cast %250 : vector<1x4x1xf32> to vector<4x1xf32>
    %252 = vector.shape_cast %251 : vector<4x1xf32> to vector<1x4x1xf32>
    %253 = vector.broadcast %252 : vector<1x4x1xf32> to vector<2x4x256xf32>
    %254 = arith.mulf %249, %253 : vector<2x4x256xf32>
    %255 = arith.addf %243, %254 : vector<2x4x256xf32>
    %c15_i32_115 = arith.constant 15 : i32
    %256 = tpu.dynamic_rotate %232 by %c15_i32_115 dim 2 : vector<2x4x256xf32>, i32 -> vector<2x4x256xf32>
    %c2_116 = arith.constant 2 : index
    %c0_117 = arith.constant 0 : index
    %c0_118 = arith.constant 0 : index
    %257 = vector.load %arg8[%c2_116, %c0_117, %c0_118] : memref<9x1x256xf32, #tpu.memory_space<vmem>>, vector<1x1x256xf32>
    %258 = vector.shape_cast %257 : vector<1x1x256xf32> to vector<1x256xf32>
    %259 = vector.shape_cast %258 : vector<1x256xf32> to vector<1x1x256xf32>
    %260 = vector.broadcast %259 : vector<1x1x256xf32> to vector<2x4x256xf32>
    %261 = arith.mulf %256, %260 : vector<2x4x256xf32>
    %c2_119 = arith.constant 2 : index
    %c0_120 = arith.constant 0 : index
    %c0_121 = arith.constant 0 : index
    %262 = vector.load %arg5[%c2_119, %c0_120, %c0_121] : memref<9x4x1xf32, #tpu.memory_space<vmem>>, vector<1x4x1xf32>
    %263 = vector.shape_cast %262 : vector<1x4x1xf32> to vector<4x1xf32>
    %264 = vector.shape_cast %263 : vector<4x1xf32> to vector<1x4x1xf32>
    %265 = vector.broadcast %264 : vector<1x4x1xf32> to vector<2x4x256xf32>
    %266 = arith.mulf %261, %265 : vector<2x4x256xf32>
    %267 = arith.addf %255, %266 : vector<2x4x256xf32>
    %c1_i32_122 = arith.constant 1 : i32
    %268 = tpu.dynamic_rotate %232 by %c1_i32_122 dim 2 : vector<2x4x256xf32>, i32 -> vector<2x4x256xf32>
    %c3_123 = arith.constant 3 : index
    %c0_124 = arith.constant 0 : index
    %c0_125 = arith.constant 0 : index
    %269 = vector.load %arg8[%c3_123, %c0_124, %c0_125] : memref<9x1x256xf32, #tpu.memory_space<vmem>>, vector<1x1x256xf32>
    %270 = vector.shape_cast %269 : vector<1x1x256xf32> to vector<1x256xf32>
    %271 = vector.shape_cast %270 : vector<1x256xf32> to vector<1x1x256xf32>
    %272 = vector.broadcast %271 : vector<1x1x256xf32> to vector<2x4x256xf32>
    %273 = arith.mulf %268, %272 : vector<2x4x256xf32>
    %c3_126 = arith.constant 3 : index
    %c0_127 = arith.constant 0 : index
    %c0_128 = arith.constant 0 : index
    %274 = vector.load %arg5[%c3_126, %c0_127, %c0_128] : memref<9x4x1xf32, #tpu.memory_space<vmem>>, vector<1x4x1xf32>
    %275 = vector.shape_cast %274 : vector<1x4x1xf32> to vector<4x1xf32>
    %276 = vector.shape_cast %275 : vector<4x1xf32> to vector<1x4x1xf32>
    %277 = vector.broadcast %276 : vector<1x4x1xf32> to vector<2x4x256xf32>
    %278 = arith.mulf %273, %277 : vector<2x4x256xf32>
    %279 = arith.addf %267, %278 : vector<2x4x256xf32>
    %c4_129 = arith.constant 4 : index
    %c0_130 = arith.constant 0 : index
    %c0_131 = arith.constant 0 : index
    %280 = vector.load %arg5[%c4_129, %c0_130, %c0_131] : memref<9x4x1xf32, #tpu.memory_space<vmem>>, vector<1x4x1xf32>
    %281 = vector.shape_cast %280 : vector<1x4x1xf32> to vector<4x1xf32>
    %282 = vector.shape_cast %281 : vector<4x1xf32> to vector<1x4x1xf32>
    %283 = vector.broadcast %282 : vector<1x4x1xf32> to vector<2x4x256xf32>
    %284 = arith.mulf %232, %283 : vector<2x4x256xf32>
    %285 = arith.addf %279, %284 : vector<2x4x256xf32>
    %c255_i32_132 = arith.constant 255 : i32
    %286 = tpu.dynamic_rotate %232 by %c255_i32_132 dim 2 : vector<2x4x256xf32>, i32 -> vector<2x4x256xf32>
    %c5_133 = arith.constant 5 : index
    %c0_134 = arith.constant 0 : index
    %c0_135 = arith.constant 0 : index
    %287 = vector.load %arg8[%c5_133, %c0_134, %c0_135] : memref<9x1x256xf32, #tpu.memory_space<vmem>>, vector<1x1x256xf32>
    %288 = vector.shape_cast %287 : vector<1x1x256xf32> to vector<1x256xf32>
    %289 = vector.shape_cast %288 : vector<1x256xf32> to vector<1x1x256xf32>
    %290 = vector.broadcast %289 : vector<1x1x256xf32> to vector<2x4x256xf32>
    %291 = arith.mulf %286, %290 : vector<2x4x256xf32>
    %c5_136 = arith.constant 5 : index
    %c0_137 = arith.constant 0 : index
    %c0_138 = arith.constant 0 : index
    %292 = vector.load %arg5[%c5_136, %c0_137, %c0_138] : memref<9x4x1xf32, #tpu.memory_space<vmem>>, vector<1x4x1xf32>
    %293 = vector.shape_cast %292 : vector<1x4x1xf32> to vector<4x1xf32>
    %294 = vector.shape_cast %293 : vector<4x1xf32> to vector<1x4x1xf32>
    %295 = vector.broadcast %294 : vector<1x4x1xf32> to vector<2x4x256xf32>
    %296 = arith.mulf %291, %295 : vector<2x4x256xf32>
    %297 = arith.addf %285, %296 : vector<2x4x256xf32>
    %c241_i32_139 = arith.constant 241 : i32
    %298 = tpu.dynamic_rotate %232 by %c241_i32_139 dim 2 : vector<2x4x256xf32>, i32 -> vector<2x4x256xf32>
    %c6_140 = arith.constant 6 : index
    %c0_141 = arith.constant 0 : index
    %c0_142 = arith.constant 0 : index
    %299 = vector.load %arg8[%c6_140, %c0_141, %c0_142] : memref<9x1x256xf32, #tpu.memory_space<vmem>>, vector<1x1x256xf32>
    %300 = vector.shape_cast %299 : vector<1x1x256xf32> to vector<1x256xf32>
    %301 = vector.shape_cast %300 : vector<1x256xf32> to vector<1x1x256xf32>
    %302 = vector.broadcast %301 : vector<1x1x256xf32> to vector<2x4x256xf32>
    %303 = arith.mulf %298, %302 : vector<2x4x256xf32>
    %c6_143 = arith.constant 6 : index
    %c0_144 = arith.constant 0 : index
    %c0_145 = arith.constant 0 : index
    %304 = vector.load %arg5[%c6_143, %c0_144, %c0_145] : memref<9x4x1xf32, #tpu.memory_space<vmem>>, vector<1x4x1xf32>
    %305 = vector.shape_cast %304 : vector<1x4x1xf32> to vector<4x1xf32>
    %306 = vector.shape_cast %305 : vector<4x1xf32> to vector<1x4x1xf32>
    %307 = vector.broadcast %306 : vector<1x4x1xf32> to vector<2x4x256xf32>
    %308 = arith.mulf %303, %307 : vector<2x4x256xf32>
    %309 = arith.addf %297, %308 : vector<2x4x256xf32>
    %c240_i32_146 = arith.constant 240 : i32
    %310 = tpu.dynamic_rotate %232 by %c240_i32_146 dim 2 : vector<2x4x256xf32>, i32 -> vector<2x4x256xf32>
    %c7_147 = arith.constant 7 : index
    %c0_148 = arith.constant 0 : index
    %c0_149 = arith.constant 0 : index
    %311 = vector.load %arg8[%c7_147, %c0_148, %c0_149] : memref<9x1x256xf32, #tpu.memory_space<vmem>>, vector<1x1x256xf32>
    %312 = vector.shape_cast %311 : vector<1x1x256xf32> to vector<1x256xf32>
    %313 = vector.shape_cast %312 : vector<1x256xf32> to vector<1x1x256xf32>
    %314 = vector.broadcast %313 : vector<1x1x256xf32> to vector<2x4x256xf32>
    %315 = arith.mulf %310, %314 : vector<2x4x256xf32>
    %c7_150 = arith.constant 7 : index
    %c0_151 = arith.constant 0 : index
    %c0_152 = arith.constant 0 : index
    %316 = vector.load %arg5[%c7_150, %c0_151, %c0_152] : memref<9x4x1xf32, #tpu.memory_space<vmem>>, vector<1x4x1xf32>
    %317 = vector.shape_cast %316 : vector<1x4x1xf32> to vector<4x1xf32>
    %318 = vector.shape_cast %317 : vector<4x1xf32> to vector<1x4x1xf32>
    %319 = vector.broadcast %318 : vector<1x4x1xf32> to vector<2x4x256xf32>
    %320 = arith.mulf %315, %319 : vector<2x4x256xf32>
    %321 = arith.addf %309, %320 : vector<2x4x256xf32>
    %c239_i32_153 = arith.constant 239 : i32
    %322 = tpu.dynamic_rotate %232 by %c239_i32_153 dim 2 : vector<2x4x256xf32>, i32 -> vector<2x4x256xf32>
    %c8_154 = arith.constant 8 : index
    %c0_155 = arith.constant 0 : index
    %c0_156 = arith.constant 0 : index
    %323 = vector.load %arg8[%c8_154, %c0_155, %c0_156] : memref<9x1x256xf32, #tpu.memory_space<vmem>>, vector<1x1x256xf32>
    %324 = vector.shape_cast %323 : vector<1x1x256xf32> to vector<1x256xf32>
    %325 = vector.shape_cast %324 : vector<1x256xf32> to vector<1x1x256xf32>
    %326 = vector.broadcast %325 : vector<1x1x256xf32> to vector<2x4x256xf32>
    %327 = arith.mulf %322, %326 : vector<2x4x256xf32>
    %c8_157 = arith.constant 8 : index
    %c0_158 = arith.constant 0 : index
    %c0_159 = arith.constant 0 : index
    %328 = vector.load %arg5[%c8_157, %c0_158, %c0_159] : memref<9x4x1xf32, #tpu.memory_space<vmem>>, vector<1x4x1xf32>
    %329 = vector.shape_cast %328 : vector<1x4x1xf32> to vector<4x1xf32>
    %330 = vector.shape_cast %329 : vector<4x1xf32> to vector<1x4x1xf32>
    %331 = vector.broadcast %330 : vector<1x4x1xf32> to vector<2x4x256xf32>
    %332 = arith.mulf %327, %331 : vector<2x4x256xf32>
    %333 = arith.addf %321, %332 : vector<2x4x256xf32>
    %c0_160 = arith.constant 0 : index
    %c0_161 = arith.constant 0 : index
    %334 = vector.load %arg6[%c0_160, %c0_161] : memref<4x1xf32, #tpu.memory_space<vmem>>, vector<4x1xf32>
    %335 = vector.shape_cast %334 : vector<4x1xf32> to vector<1x4x1xf32>
    %336 = vector.broadcast %335 : vector<1x4x1xf32> to vector<2x4x256xf32>
    %337 = arith.mulf %333, %336 : vector<2x4x256xf32>
    %c0_162 = arith.constant 0 : index
    %c0_163 = arith.constant 0 : index
    %338 = vector.load %arg7[%c0_162, %c0_163] : memref<4x1xf32, #tpu.memory_space<vmem>>, vector<4x1xf32>
    %339 = vector.shape_cast %338 : vector<4x1xf32> to vector<1x4x1xf32>
    %340 = vector.broadcast %339 : vector<1x4x1xf32> to vector<2x4x256xf32>
    %341 = arith.addf %337, %340 : vector<2x4x256xf32>
    %cst_164 = arith.constant 0.000000e+00 : f32
    %342 = vector.broadcast %cst_164 : f32 to vector<2x4x256xf32>
    %343 = arith.cmpf oge, %341, %342 : vector<2x4x256xf32>
    %cst_165 = arith.constant 2.000000e-01 : f32
    %344 = vector.broadcast %cst_165 : f32 to vector<2x4x256xf32>
    %345 = arith.mulf %344, %341 : vector<2x4x256xf32>
    %346 = arith.select %343, %341, %345 : vector<2x4x256xi1>, vector<2x4x256xf32>
    %c0_166 = arith.constant 0 : index
    %c0_167 = arith.constant 0 : index
    %c0_168 = arith.constant 0 : index
    %347 = vector.load %arg9[%c0_166, %c0_167, %c0_168] : memref<2x4x256xf32, #tpu.memory_space<vmem>>, vector<2x4x256xf32>
    tpu.vector_store %arg9[%c0_166, %c0_167, %c0_168], %346 {strides = array<i32>} : memref<2x4x256xf32, #tpu.memory_space<vmem>>, vector<2x4x256xf32>,
    return
  }
  func.func @transform_0(%arg0: i32) -> (i32, i32, i32) {
    %c0_i32 = arith.constant 0 : i32
    %c0_i32_0 = arith.constant 0 : i32
    %c0_i32_1 = arith.constant 0 : i32
    return %arg0, %c0_i32, %c0_i32_0 : i32, i32, i32
  }
  func.func @transform_1(%arg0: i32) -> (i32, i32, i32) {
    %c0_i32 = arith.constant 0 : i32
    %c0_i32_0 = arith.constant 0 : i32
    %c0_i32_1 = arith.constant 0 : i32
    return %arg0, %c0_i32, %c0_i32_0 : i32, i32, i32
  }
  func.func @transform_2(%arg0: i32) -> (i32, i32, i32) {
    %c0_i32 = arith.constant 0 : i32
    %c0_i32_0 = arith.constant 0 : i32
    %c0_i32_1 = arith.constant 0 : i32
    %c0_i32_2 = arith.constant 0 : i32
    return %c0_i32, %c0_i32_0, %c0_i32_1 : i32, i32, i32
  }
  func.func @transform_3(%arg0: i32) -> i32 {
    %c0_i32 = arith.constant 0 : i32
    %c0_i32_0 = arith.constant 0 : i32
    return %c0_i32 : i32
  }
  func.func @transform_4(%arg0: i32) -> (i32, i32, i32) {
    %c0_i32 = arith.constant 0 : i32
    %c0_i32_0 = arith.constant 0 : i32
    %c0_i32_1 = arith.constant 0 : i32
    %c0_i32_2 = arith.constant 0 : i32
    return %c0_i32, %c0_i32_0, %c0_i32_1 : i32, i32, i32
  }
  func.func @transform_5(%arg0: i32) -> (i32, i32) {
    %c0_i32 = arith.constant 0 : i32
    %c0_i32_0 = arith.constant 0 : i32
    %c0_i32_1 = arith.constant 0 : i32
    return %c0_i32, %c0_i32_0 : i32, i32
  }
  func.func @transform_6(%arg0: i32) -> (i32, i32) {
    %c0_i32 = arith.constant 0 : i32
    %c0_i32_0 = arith.constant 0 : i32
    %c0_i32_1 = arith.constant 0 : i32
    return %c0_i32, %c0_i32_0 : i32, i32
  }
  func.func @transform_7(%arg0: i32) -> (i32, i32, i32) {
    %c0_i32 = arith.constant 0 : i32
    %c0_i32_0 = arith.constant 0 : i32
    %c0_i32_1 = arith.constant 0 : i32
    %c0_i32_2 = arith.constant 0 : i32
    return %c0_i32, %c0_i32_0, %c0_i32_1 : i32, i32, i32
  }
  func.func @transform_8(%arg0: i32) -> (i32, i32, i32) {
    %c0_i32 = arith.constant 0 : i32
    %c0_i32_0 = arith.constant 0 : i32
    %c0_i32_1 = arith.constant 0 : i32
    return %arg0, %c0_i32, %c0_i32_0 : i32, i32, i32
  }
}

</mosaic_0001>

<bundles_post_ra>
// kernel: tpu_custom_call.1
= control target key start
LH: loop header
LB: loop body
LE: loop exit
PB: predicated region body
PF: predicated region fallthrough
CT: control target
= control target key end

     0   :  { %v1216_v2 = vmov 0   ;;  %s1217_s9 = smov 17   ;;  %s2215_s0 = inlined_call_operand.vmem [shape: f32[2,4,256], index: 0, kind: input, shape index: {}]   ;;  %s2216_s1 = inlined_call_operand.vmem [shape: f32[2,4,256], index: 1, kind: input, shape index: {}]   ;;  %s2217_s2 = inlined_call_operand.vmem [shape: f32[9,4,1], index: 2, kind: input, shape index: {}]   ;;  %s2218_s3 = inlined_call_operand.<no memory space> [shape: f32[1], index: 3, kind: input, shape index: {}]   ;;  %s2219_s4 = inlined_call_operand.vmem [shape: f32[9,4,1], index: 4, kind: input, shape index: {}]   ;;  %s2220_s5 = inlined_call_operand.vmem [shape: f32[4,1], index: 5, kind: input, shape index: {}]   ;;  %s2221_s6 = inlined_call_operand.vmem [shape: f32[4,1], index: 6, kind: input, shape index: {}]   ;;  %s2222_s7 = inlined_call_operand.vmem [shape: f32[9,1,256], index: 7, kind: input, shape index: {}]   ;;  %s2223_s8 = inlined_call_operand.hbm [shape: f32[2,4,256], index: 8, kind: output, shape index: {}]  }
   0x1   :  { %v1277_v0 = vld [vmem:[%s2215_s0] sm:$0xff]  ;;  %1172 = vset.pattern.permute.xlu0 %v1216_v2  ;;  %v1287_v3 = vld [vmem:[%s2215_s0 + $0x8] sm:$0xff]  ;;  %1173 = vset.pattern.permute.xlu1 %v1216_v2 }
   0x2   :  { %v72_v1 = vld [vmem:[%s2217_s2] sm:$0xf]  ;;  %41 = vrot.lane.b32.xlu1 %v1277_v0, %s1217_s9  ;;  %v1129_v4 = vld [vmem:[%s2217_s2 + $0x4] sm:$0xf]  ;;  %v38_v5 = vcombine.high %v1287_v3, %v1287_v3  ;;  %v37_v6 = vcombine.high %v1277_v0, %v1277_v0 }
   0x3   :  { %75 = vperm.xlu0 %1172, %v72_v1  }
   0x6   :  { %43 = vrot.lane.b32.xlu1 %v1287_v3, %s1217_s9 }
   0x7   :  { %116 = vperm.xlu0 %1172, %v1129_v4  }
   0x8   :  { %14 = vsyncpa [#allocation4], 0  ;;  %s1218_s0 = smov 16   ;;  %v1134_v7 = vld [vmem:[%s2217_s2 + $0x10] sm:$0xf]  ;;  %s1219_s18 = smov 15   ;;  %v49_v32 = vlaneseq }
   0x9   :  { %v1131_v8 = vld [vmem:[%s2217_s2 + $0x8] sm:$0xf]  ;;  %v1133_v9 = vld [vmem:[%s2217_s2 + $0xc] sm:$0xf]  ;;  %s1220_s21 = smov 1   ;;  %s1221_s24 = smov 127  }
   0xa   :  { %47 = vrot.lane.b32.xlu1 %v38_v5, %s1217_s9  ;;  %v1136_v10 = vld [vmem:[%s2217_s2 + $0x14] sm:$0xf]  ;;  %v1138_v11 = vld [vmem:[%s2217_s2 + $0x18] sm:$0xf]  ;;  %s1222_s27 = smov 113   ;;  %s1223_s30 = smov 112  }
   0xb   :  { %45 = vrot.lane.b32.xlu0 %v37_v6, %s1217_s9  ;;  %v1140_v12 = vld [vmem:[%s2217_s2 + $0x1c] sm:$0xf]  ;;  %v1142_v13 = vld [vmem:[%s2217_s2 + $0x20] sm:$0xf]  ;;  %s1224_s12 = smov 111   ;;  %v59_v35 = vshrl.u32 %v49_v32, 7 }
   0xc   :  { %v1391_v36 = vand.u32 127, %v49_v32  ;;  %v1225_v37 = vmov 839922192   ;;  %v1404_v43 = vld [vmem:[%s2222_s7] sm:$0x3]  ;;  %vm423_vm8 = vcmask 1043456  }
   0xd   :  { %v224_v38 = vunpack.c.l.s4 %v1225_v37  ;;  %v1397_v41 = vsub.s32 0, %v59_v35  ;;  %v1399_v42 = vsub.s32 1, %v59_v35  ;;  %v1409_v44 = vld [vmem:[%s2222_s7 + $0x2] sm:$0x3]  ;;  %v1418_v47 = vld [vmem:[%s2222_s7 + $0x4] sm:$0x3] }
   0xe   :  { %84 = vrot.lane.b32.xlu1 %v1287_v3, %s1218_s0  ;;  %vm51_vm0 = vcmp.lt.s32.totalorder %v1391_v36, 17  ;;  %vm90_vm1 = vcmp.lt.s32.totalorder %v1391_v36, 16  ;;  %v1437_v52 = vld [vmem:[%s2222_s7 + $0x6] sm:$0x3]  ;;  %vm135_vm2 = vcmp.lt.s32.totalorder %v1391_v36, 15  ;;  %vm180_vm3 = vcmp.lt.s32.totalorder %v1391_v36, 1 }
   0xf   :  { %82 = vrot.lane.b32.xlu0 %v1277_v0, %s1218_s0  ;;  %v225_v45 = vunpack.c.0.s8 %v224_v38  ;;  %v1424_v49 = vrot.slane %v1404_v43, %v1397_v41  ;;  %v1428_v50 = vrot.slane %v1404_v43, %v1399_v42  ;;  %v1432_v51 = vrot.slane %v1409_v44, %v1397_v41  ;;  %v1457_v59 = vld [vmem:[%s2222_s7 + $0xa] sm:$0x3]  ;;  %v1464_v61 = vld [vmem:[%s2222_s7 + $0xc] sm:$0x3]  ;;  %v1484_v4 = vld [vmem:[%s2222_s7 + $0xe] sm:$0x3] }
  0x10   :  { %v1447_v56 = vrot.slane %v1409_v44, %v1399_v42  ;;  %v1452_v58 = vrot.slane %v1418_v47, %v1397_v41  ;;  %v1468_v62 = vrot.slane %v1418_v47, %v1399_v42  ;;  %v1473_v63 = vrot.slane %v1437_v52, %v1397_v41  ;;  %2247 = vst [vmem:[#allocation11_spill] sm:$0xff] %v1484_v4 }
  0x11   :  { %2242 = vst [vmem:[#allocation6_spill] sm:$0xff] %v1424_v49  ;;  %2243 = vst [vmem:[#allocation7_spill] sm:$0xff] %v1428_v50  ;;  %v228_v57 = vsub.s32 %v225_v45, %v59_v35  ;;  %v1477_v1 = vrot.slane %v1437_v52, %v1399_v42  ;;  %v1524_v32 = vrot.slane %v1484_v4, %v1399_v42  ;;  %vm251_vm4 = vcmp.lt.s32.totalorder %v1391_v36, 127 }
  0x12   :  { %88 = vrot.lane.b32.xlu1 %v38_v5, %s1218_s0  ;;  %2244 = vst [vmem:[#allocation8_spill] sm:$0xff] %v1432_v51  ;;  %2245 = vst [vmem:[#allocation9_spill] sm:$0xff] %v1447_v56  ;;  %vm296_vm5 = vcmp.lt.s32.totalorder %v1391_v36, 113  ;;  %vm341_vm6 = vcmp.lt.s32.totalorder %v1391_v36, 112  ;;  %vm386_vm7 = vcmp.lt.s32.totalorder %v1391_v36, 111 }
  0x13   :  { %86 = vrot.lane.b32.xlu0 %v37_v6, %s1218_s0  ;;  %2246 = vst [vmem:[#allocation10_spill] sm:$0xff] %v1468_v62 }
  0x16   :  { %221 = vperm.xlu1 %1173, %v1134_v7  }
  0x17   :  { %161 = vperm.xlu0 %1172, %v1131_v8  }
  0x1a   :  { %129 = vrot.lane.b32.xlu1 %v1287_v3, %s1219_s18 }
  0x1b   :  { %127 = vrot.lane.b32.xlu0 %v1277_v0, %s1219_s18 }
  0x1e   :  { %133 = vrot.lane.b32.xlu1 %v38_v5, %s1219_s18 }
  0x1f   :  { %131 = vrot.lane.b32.xlu0 %v37_v6, %s1219_s18 }
  0x22   :  { %172 = vrot.lane.b32.xlu1 %v1277_v0, %s1220_s21 }
  0x23   :  { %206 = vperm.xlu0 %1172, %v1133_v9   ;;  %v1494_v9 = vld [vmem:[%s2222_s7 + $0x10] sm:$0x3] }
  0x24   :  { %2248 = vst [vmem:[#allocation12_spill] sm:$0xff] %v1494_v9  ;;  %v1540_v38 = vrot.slane %v1494_v9, %v1397_v41 }
  0x26   :  { %176 = vrot.lane.b32.xlu1 %v37_v6, %s1220_s21  ;;  %2249 = vst [vmem:[#allocation13_spill] sm:$0xff] %v1540_v38 }
  0x27   :  { %174 = vrot.lane.b32.xlu0 %v1287_v3, %s1220_s21 }
  0x2a   :  { %277 = vperm.xlu1 %1173, %v1136_v10   ;;  %v1498_v10 = vrot.slane %v1457_v59, %v1397_v41 }
  0x2b   :  { %178 = vrot.lane.b32.xlu0 %v38_v5, %s1220_s21 }
  0x2e   :  { %245 = vrot.lane.b32.xlu1 %v1287_v3, %s1221_s24 }
  0x2f   :  { %243 = vrot.lane.b32.xlu0 %v1277_v0, %s1221_s24 }
  0x32   :  { %249 = vrot.lane.b32.xlu1 %v38_v5, %s1221_s24 }
  0x33   :  { %247 = vrot.lane.b32.xlu0 %v37_v6, %s1221_s24 }
  0x36   :  { %288 = vrot.lane.b32.xlu1 %v1277_v0, %s1222_s27 }
  0x37   :  { %322 = vperm.xlu0 %1172, %v1138_v11   ;;  %v1502_v11 = vrot.slane %v1457_v59, %v1399_v42 }
  0x3a   :  { %292 = vrot.lane.b32.xlu1 %v37_v6, %s1222_s27 }
  0x3b   :  { %290 = vrot.lane.b32.xlu0 %v1287_v3, %s1222_s27 }
  0x3e   :  { %367 = vperm.xlu1 %1173, %v1140_v12   ;;  %v1506_v12 = vrot.slane %v1464_v61, %v1397_v41 }
  0x3f   :  { %294 = vrot.lane.b32.xlu0 %v38_v5, %s1222_s27 }
  0x42   :  { %335 = vrot.lane.b32.xlu1 %v1287_v3, %s1223_s30 }
  0x43   :  { %333 = vrot.lane.b32.xlu0 %v1277_v0, %s1223_s30 }
  0x46   :  { %339 = vrot.lane.b32.xlu1 %v38_v5, %s1223_s30 }
  0x47   :  { %337 = vrot.lane.b32.xlu0 %v37_v6, %s1223_s30 }
  0x4a   :  { %378 = vrot.lane.b32.xlu1 %v1277_v0, %s1224_s12 }
  0x4b   :  { %412 = vperm.xlu0 %1172, %v1142_v13   ;;  %v1510_v13 = vrot.slane %v1464_v61, %v1399_v42 }
  0x4e   :  { %382 = vrot.lane.b32.xlu1 %v37_v6, %s1224_s12 }
  0x4f   :  { %380 = vrot.lane.b32.xlu0 %v1287_v3, %s1224_s12 }
  0x53   :  { %384 = vrot.lane.b32.xlu0 %v38_v5, %s1224_s12 }
  0x74   :  { %v1363_v14 = vpop.permute.xlu1 %41 }
  0x78   :  { %v44_v15 = vpop.permute.xlu1 %43 }
  0x7c   :  { %v48_v17 = vpop.permute.xlu1 %47 }
  0x7d   :  { %v53_v53 = vsel %vm51_vm0, %v44_v15, %v48_v17  ;;  %v55_v54 = vsel %vm51_vm0, %v48_v17, %v44_v15 }
  0x7e   :  { %v1365_v16 = vpop.permute.xlu0 %75  ;;  %v70_v5 = vmul.f32 %v1424_v49, %v55_v54  ;;  %v71_v6 = vmul.f32 %v1428_v50, %v53_v53 }
  0x80   :  { %v85_v20 = vpop.permute.xlu1 %84  ;;  %v80_v45 = vmul.f32 %v1365_v16, %v70_v5  ;;  %v81_v53 = vmul.f32 %v1365_v16, %v71_v6 }
  0x82   :  { %v1367_v18 = vpop.permute.xlu0 %116 }
  0x84   :  { %v89_v22 = vpop.permute.xlu1 %88 }
  0x85   :  { %v94_v55 = vsel %vm90_vm1, %v89_v22, %v85_v20  ;;  %v92_v7 = vsel %vm90_vm1, %v85_v20, %v89_v22  ;;  %v1520_v22 = vrot.slane %v1484_v4, %v1397_v41 }
  0x86   :  { %v1369_v19 = vpop.permute.xlu0 %45  ;;  %v110_v8 = vmul.f32 %v1432_v51, %v94_v55  ;;  %v111_v35 = vmul.f32 %v1447_v56, %v92_v7  ;;  %v1547_v55 = vrot.slane %v1494_v9, %v1399_v42 }
  0x87   :  { %v52_v37 = vsel %vm51_vm0, %v1363_v14, %v1369_v19 }
  0x88   :  { %v121_v54 = vmul.f32 %v1367_v18, %v110_v8  ;;  %2250 = vst [vmem:[#allocation14_spill] sm:$0xff] %v1547_v55  ;;  %v69_v8 = vmul.f32 %v1428_v50, %v52_v37 }
  0x8a   :  { %v83_v21 = vpop.permute.xlu0 %82 }
  0x8e   :  { %v87_v23 = vpop.permute.xlu0 %86 }
  0x8f   :  { %v91_v15 = vsel %vm90_vm1, %v83_v21, %v87_v23  ;;  %v93_v17 = vsel %vm90_vm1, %v87_v23, %v83_v21  ;;  %v54_v21 = vsel %vm51_vm0, %v1369_v19, %v1363_v14 }
  0x90   :  { %v108_v14 = vmul.f32 %v1432_v51, %v93_v17  ;;  %v109_v19 = vmul.f32 %v1447_v56, %v91_v15  ;;  %v68_v6 = vmul.f32 %v1424_v49, %v54_v21  ;;  %v122_v51 = vmul.f32 %v1367_v18, %v111_v35 }
  0x91   :  { %v1371_v24 = vpop.permute.xlu1 %221 }
  0x92   :  { %v1373_v25 = vpop.permute.xlu0 %161  ;;  %v120_v35 = vmul.f32 %v1367_v18, %v109_v19 }
  0x95   :  { %v1375_v26 = vpop.permute.xlu1 %129 }
  0x96   :  { %v1377_v27 = vpop.permute.xlu0 %127 }
  0x99   :  { %v1379_v28 = vpop.permute.xlu1 %133 }
  0x9a   :  { %v1381_v29 = vpop.permute.xlu0 %131  ;;  %v137_v15 = vsel %vm135_vm2, %v1375_v26, %v1379_v28  ;;  %v139_v17 = vsel %vm135_vm2, %v1379_v28, %v1375_v26 }
  0x9b   :  { %v136_v7 = vsel %vm135_vm2, %v1377_v27, %v1381_v29  ;;  %v138_v5 = vsel %vm135_vm2, %v1381_v29, %v1377_v27  ;;  %v229_v27 = vrot.slane %v1371_v24, %v228_v57  ;;  %v119_v57 = vmul.f32 %v1367_v18, %v108_v14 }
  0x9c   :  { %v153_v9 = vmul.f32 %v1452_v58, %v138_v5  ;;  %v154_v26 = vmul.f32 %v1468_v62, %v136_v7  ;;  %v78_v7 = vmul.f32 %v1365_v16, %v68_v6  ;;  %v79_v5 = vmul.f32 %v1365_v16, %v69_v8 }
  0x9d   :  { %v1383_v30 = vpop.permute.xlu1 %172  ;;  %v232_v18 = vmul.f32 %v229_v27, %v1287_v3 }
  0x9e   :  { %v1385_v31 = vpop.permute.xlu0 %206  ;;  %v164_v6 = vmul.f32 %v1373_v25, %v153_v9  ;;  %v165_v16 = vmul.f32 %v1373_v25, %v154_v26  ;;  %v123_v8 = vadd.f32 %v119_v57, %v78_v7 }
  0xa0   :  { %v168_v26 = vadd.f32 %v164_v6, %v123_v8 }
  0xa1   :  { %v1387_v33 = vpop.permute.xlu1 %176 }
  0xa2   :  { %v1389_v34 = vpop.permute.xlu0 %174  ;;  %v181_v29 = vsel %vm180_vm3, %v1383_v30, %v1387_v33  ;;  %v183_v37 = vsel %vm180_vm3, %v1387_v33, %v1383_v30  ;;  %v155_v30 = vmul.f32 %v1452_v58, %v139_v17  ;;  %v156_v33 = vmul.f32 %v1468_v62, %v137_v15 }
  0xa3   :  { %v198_v50 = vmul.f32 %v1473_v63, %v183_v37  ;;  %v199_v49 = vmul.f32 %v1477_v1, %v181_v29  ;;  %v125_v15 = vadd.f32 %v121_v54, %v80_v45  ;;  %v126_v17 = vadd.f32 %v122_v51, %v81_v53 }
  0xa4   :  { %v124_v37 = vadd.f32 %v120_v35, %v79_v5  ;;  %v166_v29 = vmul.f32 %v1373_v25, %v155_v30  ;;  %v167_v62 = vmul.f32 %v1373_v25, %v156_v33  ;;  %v236_v54 = vcombine.high %v232_v18, %v232_v18 }
  0xa5   :  { %v1393_v39 = vpop.permute.xlu1 %277  ;;  %v210_v3 = vmul.f32 %v1385_v31, %v199_v49 }
  0xa6   :  { %v1395_v40 = vpop.permute.xlu0 %178  ;;  %v169_v49 = vadd.f32 %v165_v16, %v124_v37 }
  0xa7   :  { %v182_v24 = vsel %vm180_vm3, %v1389_v34, %v1395_v40  ;;  %v184_v28 = vsel %vm180_vm3, %v1395_v40, %v1389_v34  ;;  %v231_v34 = vmul.f32 %v229_v27, %v1277_v0  ;;  %v209_v0 = vmul.f32 %v1385_v31, %v198_v50 }
  0xa8   :  { %v200_v40 = vmul.f32 %v1473_v63, %v184_v28  ;;  %v201_v14 = vmul.f32 %v1477_v1, %v182_v24  ;;  %v214_v30 = vadd.f32 %v210_v3, %v169_v49 }
  0xa9   :  { %v1413_v46 = vpop.permute.xlu1 %245  ;;  %v235_v53 = vcombine.high %v231_v34, %v231_v34 }
  0xaa   :  { %v1420_v48 = vpop.permute.xlu0 %243  ;;  %v211_v27 = vmul.f32 %v1385_v31, %v200_v40  ;;  %v212_v25 = vmul.f32 %v1385_v31, %v201_v14  ;;  %v213_v31 = vadd.f32 %v209_v0, %v168_v26 }
  0xad   :  { %v1459_v60 = vpop.permute.xlu1 %249 }
  0xae   :  { %v1479_v2 = vpop.permute.xlu0 %247  ;;  %v253_v33 = vsel %vm251_vm4, %v1413_v46, %v1459_v60 }
  0xaf   :  { %v252_v45 = vsel %vm251_vm4, %v1420_v48, %v1479_v2  ;;  %v254_v51 = vsel %vm251_vm4, %v1479_v2, %v1420_v48  ;;  %v170_v48 = vadd.f32 %v166_v29, %v125_v15  ;;  %v171_v2 = vadd.f32 %v167_v62, %v126_v17 }
  0xb0   :  { %v269_v57 = vmul.f32 %v1498_v10, %v252_v45  ;;  %v270_v35 = vmul.f32 %v1502_v11, %v254_v51  ;;  %v239_v45 = vadd.f32 %v231_v34, %v213_v31  ;;  %v240_v51 = vadd.f32 %v235_v53, %v214_v30 }
  0xb1   :  { %v1516_v20 = vpop.permute.xlu1 %288  ;;  %v215_v7 = vadd.f32 %v211_v27, %v170_v48  ;;  %v216_v5 = vadd.f32 %v212_v25, %v171_v2 }
  0xb2   :  { %v1536_v23 = vpop.permute.xlu0 %322  ;;  %v280_v8 = vmul.f32 %v1393_v39, %v269_v57  ;;  %v281_v37 = vmul.f32 %v1393_v39, %v270_v35 }
  0xb3   :  { %v241_v26 = vadd.f32 %v232_v18, %v215_v7  ;;  %v242_v49 = vadd.f32 %v236_v54, %v216_v5 }
  0xb4   :  { %v284_v53 = vadd.f32 %v280_v8, %v239_v45  ;;  %v285_v57 = vadd.f32 %v281_v37, %v240_v51 }
  0xb5   :  { %v293_v56 = vpop.permute.xlu1 %292 }
  0xb6   :  { %v291_v21 = vpop.permute.xlu0 %290  ;;  %v297_v24 = vsel %vm296_vm5, %v1516_v20, %v293_v56  ;;  %v299_v28 = vsel %vm296_vm5, %v293_v56, %v1516_v20  ;;  %v255_v56 = vsel %vm251_vm4, %v1459_v60, %v1413_v46  ;;  %v271_v60 = vmul.f32 %v1498_v10, %v253_v33 }
  0xb7   :  { %v314_v62 = vmul.f32 %v1506_v12, %v297_v24  ;;  %v315_v40 = vmul.f32 %v1510_v13, %v299_v28  ;;  %v272_v16 = vmul.f32 %v1502_v11, %v255_v56 }
  0xb9   :  { %v1599_v4 = vpop.permute.xlu1 %367  ;;  %v325_v24 = vmul.f32 %v1536_v23, %v314_v62  ;;  %v326_v28 = vmul.f32 %v1536_v23, %v315_v40  ;;  %v283_v48 = vmul.f32 %v1393_v39, %v272_v16 }
  0xba   :  { %v295_v19 = vpop.permute.xlu0 %294 }
  0xbb   :  { %v298_v15 = vsel %vm296_vm5, %v291_v21, %v295_v19  ;;  %v300_v17 = vsel %vm296_vm5, %v295_v19, %v291_v21  ;;  %v330_v7 = vadd.f32 %v326_v28, %v285_v57 }
  0xbc   :  { %v316_v27 = vmul.f32 %v1506_v12, %v298_v15  ;;  %v317_v25 = vmul.f32 %v1510_v13, %v300_v17 }
  0xbd   :  { %v336_v9 = vpop.permute.xlu1 %335 }
  0xbe   :  { %v334_v50 = vpop.permute.xlu0 %333  ;;  %v327_v54 = vmul.f32 %v1536_v23, %v316_v27  ;;  %v328_v30 = vmul.f32 %v1536_v23, %v317_v25 }
  0xc1   :  { %v340_v20 = vpop.permute.xlu1 %339 }
  0xc2   :  { %v338_v14 = vpop.permute.xlu0 %337  ;;  %v343_v29 = vsel %vm341_vm6, %v336_v9, %v340_v20  ;;  %v345_v21 = vsel %vm341_vm6, %v340_v20, %v336_v9  ;;  %v282_v9 = vmul.f32 %v1393_v39, %v271_v60  ;;  %v329_v20 = vadd.f32 %v325_v24, %v284_v53 }
  0xc3   :  { %v342_v6 = vsel %vm341_vm6, %v334_v50, %v338_v14  ;;  %v344_v46 = vsel %vm341_vm6, %v338_v14, %v334_v50  ;;  %v361_v2 = vmul.f32 %v1520_v22, %v343_v29  ;;  %v362_v34 = vmul.f32 %v1524_v32, %v345_v21 }
  0xc4   :  { %v359_v19 = vmul.f32 %v1520_v22, %v342_v6  ;;  %v360_v0 = vmul.f32 %v1524_v32, %v344_v46  ;;  %v286_v40 = vadd.f32 %v282_v9, %v241_v26  ;;  %v287_v14 = vadd.f32 %v283_v48, %v242_v49 }
  0xc5   :  { %v379_v3 = vpop.permute.xlu1 %378  ;;  %v372_v15 = vmul.f32 %v1599_v4, %v361_v2  ;;  %v373_v17 = vmul.f32 %v1599_v4, %v362_v34 }
  0xc6   :  { %v413_v50 = vpop.permute.xlu0 %412  ;;  %v370_v35 = vmul.f32 %v1599_v4, %v359_v19  ;;  %v371_v31 = vmul.f32 %v1599_v4, %v360_v0  ;;  %v331_v16 = vadd.f32 %v327_v54, %v286_v40  ;;  %v332_v8 = vadd.f32 %v328_v30, %v287_v14 }
  0xc8   :  { %v374_v23 = vadd.f32 %v370_v35, %v329_v20  ;;  %v375_v6 = vadd.f32 %v371_v31, %v330_v7  ;;  %v376_v45 = vadd.f32 %v372_v15, %v331_v16  ;;  %v377_v51 = vadd.f32 %v373_v17, %v332_v8 }
  0xc9   :  { %v383_v18 = vpop.permute.xlu1 %382 }
  0xca   :  { %v387_v33 = vsel %vm386_vm7, %v379_v3, %v383_v18  ;;  %v389_v39 = vsel %vm386_vm7, %v383_v18, %v379_v3  ;;  %v381_v56 = vpop.permute.xlu0 %380 }
  0xcb   :  { %v404_v5 = vmul.f32 %v1540_v38, %v387_v33  ;;  %v405_v62 = vmul.f32 %v1547_v55, %v389_v39 }
  0xcd   :  { %v415_v46 = vmul.f32 %v413_v50, %v404_v5  ;;  %v416_v60 = vmul.f32 %v413_v50, %v405_v62 }
  0xce   :  { %v385_v37 = vpop.permute.xlu0 %384 }
  0xcf   :  { %v419_v29 = vadd.f32 %v415_v46, %v374_v23  ;;  %v420_v21 = vadd.f32 %v416_v60, %v375_v6  ;;  %v388_v19 = vsel %vm386_vm7, %v381_v56, %v385_v37  ;;  %v390_v0 = vsel %vm386_vm7, %v385_v37, %v381_v56 }
  0xd0   :  { %v406_v3 = vmul.f32 %v1540_v38, %v388_v19  ;;  %v407_v4 = vmul.f32 %v1547_v55, %v390_v0  ;;  %v1152_v19 = vld [vmem:[%s2219_s4 + $0x8] sm:$0xf]  ;;  %v1151_v0 = vld [vmem:[%s2219_s4 + $0x4] sm:$0xf] }
  0xd1   :  { %v424_v27 = vsel %vm423_vm8, %v419_v29, 0.0  ;;  %v431_v25 = vsel %vm423_vm8, %v420_v21, 0.0  ;;  %v828_v21 = vld [vmem:[%s2219_s4] sm:$0xf] }
  0xd2   :  { %v425_v26 = vrot.slane %v424_v27, 4  ;;  %v432_v49 = vrot.slane %v431_v25, 4  ;;  %v417_v24 = vmul.f32 %v413_v50, %v406_v3  ;;  %v418_v28 = vmul.f32 %v413_v50, %v407_v4  ;;  %v1154_v3 = vld [vmem:[%s2219_s4 + $0x10] sm:$0xf]  ;;  %v1153_v4 = vld [vmem:[%s2219_s4 + $0xc] sm:$0xf] }
  0xd3   :  { %v453_v50 = vstv %s2218_s3 }
  0xd4   :  { %v426_v9 = vadd.f32 %v425_v26, %v424_v27  ;;  %v433_v48 = vadd.f32 %v432_v49, %v431_v25  ;;  %v421_v2 = vadd.f32 %v417_v24, %v376_v45  ;;  %v422_v34 = vadd.f32 %v418_v28, %v377_v51  ;;  %v1156_v45 = vld [vmem:[%s2219_s4 + $0x18] sm:$0xf]  ;;  %v1155_v51 = vld [vmem:[%s2219_s4 + $0x14] sm:$0xf]  ;;  %v1158_v27 = vld [vmem:[%s2219_s4 + $0x20] sm:$0xf] }
  0xd5   :  { %v1157_v25 = vld [vmem:[%s2219_s4 + $0x1c] sm:$0xf] }
  0xd6   :  { %v427_v53 = vrot.slane %v426_v9, 2  ;;  %v434_v57 = vrot.slane %v433_v48, 2  ;;  %v438_v35 = vsel %vm423_vm8, %v421_v2, 0.0  ;;  %v445_v31 = vsel %vm423_vm8, %v422_v34, 0.0 }
  0xd7   :  { %v439_v18 = vrot.slane %v438_v35, 4  ;;  %v446_v54 = vrot.slane %v445_v31, 4 }
  0xd8   :  { %v428_v30 = vadd.f32 %v427_v53, %v426_v9  ;;  %v435_v33 = vadd.f32 %v434_v57, %v433_v48 }
  0xd9   :  { %v440_v39 = vadd.f32 %v439_v18, %v438_v35  ;;  %v447_v56 = vadd.f32 %v446_v54, %v445_v31  ;;  %v1143_v31 = vadd.f32 -1.0, %v1404_v43  ;;  %v1144_v18 = vadd.f32 -1.0, %v1409_v44 }
  0xda   :  { %v429_v20 = vrot.slane %v428_v30, 1  ;;  %v436_v7 = vrot.slane %v435_v33, 1  ;;  %v1148_v44 = vadd.f32 -1.0, %v1464_v61 }
  0xdb   :  { %v441_v5 = vrot.slane %v440_v39, 2  ;;  %v448_v62 = vrot.slane %v447_v56, 2 }
  0xdc   :  { %v430_v40 = vadd.f32 %v429_v20, %v428_v30  ;;  %v437_v17 = vadd.f32 %v436_v7, %v435_v33  ;;  %v1145_v33 = vadd.f32 -1.0, %v1418_v47  ;;  %v475_v20 = vmul.f32 1e+30, %v1143_v31 }
  0xdd   :  { %v442_v14 = vadd.f32 %v441_v5, %v440_v39  ;;  %v449_v15 = vadd.f32 %v448_v62, %v447_v56  ;;  %v1146_v39 = vadd.f32 -1.0, %v1437_v52  ;;  %v1147_v56 = vadd.f32 -1.0, %v1457_v59 }
  0xde   :  { %v1691_v23 = vadd.f32 %v453_v50, %v430_v40  ;;  %v1695_v16 = vadd.f32 %v453_v50, %v437_v17  ;;  %v512_v7 = vmul.f32 1e+30, %v1144_v18  ;;  %v549_v62 = vmul.f32 1e+30, %v1145_v33 }
  0xdf   :  { %v443_v6 = vrot.slane %v442_v14, 1  ;;  %v450_v46 = vrot.slane %v449_v15, 1  ;;  %v586_v43 = vmul.f32 1e+30, %v1146_v39  ;;  %v623_v40 = vmul.f32 1e+30, %v1147_v56 }
  0xe0   :  { %458 = vrot.lane.b32.xlu1 %v1691_v23, %s1217_s9  ;;  %v517_v47 = vrot.slane %v512_v7, %v1397_v41 }
  0xe1   :  { %v444_v60 = vadd.f32 %v443_v6, %v442_v14  ;;  %v451_v8 = vadd.f32 %v450_v46, %v449_v15  ;;  %v480_v14 = vrot.slane %v475_v20, %v1397_v41  ;;  %v484_v15 = vrot.slane %v475_v20, %v1399_v42  ;;  %v2254_v20 = vld [vmem:[#allocation12_spill] sm:$0xff] }
  0xe2   :  { %v521_v6 = vrot.slane %v512_v7, %v1399_v42  ;;  %v1150_v7 = vadd.f32 -1.0, %v2254_v20 }
  0xe3   :  { %v1697_v37 = vadd.f32 %v453_v50, %v444_v60  ;;  %v1703_v29 = vadd.f32 %v453_v50, %v451_v8  ;;  %v2251_v60 = vld [vmem:[#allocation11_spill] sm:$0xff]  ;;  %v1820_v8 = vrot.slane %v549_v62, %v1397_v41 }
  0xe4   :  { %462 = vrot.lane.b32.xlu1 %v1695_v16, %s1217_s9  ;;  %v1149_v61 = vadd.f32 -1.0, %v2251_v60 }
  0xe5   :  { %460 = vrot.lane.b32.xlu0 %v1697_v37, %s1217_s9 }
  0xe6   :  { %v697_v56 = vmul.f32 1e+30, %v1149_v61 }
  0xe8   :  { %495 = vrot.lane.b32.xlu1 %v1691_v23, %s1218_s0 }
  0xe9   :  { %464 = vrot.lane.b32.xlu0 %v1703_v29, %s1217_s9 }
  0xec   :  { %499 = vrot.lane.b32.xlu1 %v1695_v16, %s1218_s0 }
  0xed   :  { %497 = vrot.lane.b32.xlu0 %v1697_v37, %s1218_s0 }
  0xf0   :  { %532 = vrot.lane.b32.xlu1 %v1691_v23, %s1219_s18 }
  0xf1   :  { %501 = vrot.lane.b32.xlu0 %v1703_v29, %s1218_s0 }
  0xf4   :  { %536 = vrot.lane.b32.xlu1 %v1695_v16, %s1219_s18 }
  0xf5   :  { %534 = vrot.lane.b32.xlu0 %v1697_v37, %s1219_s18 }
  0xf8   :  { %569 = vrot.lane.b32.xlu1 %v1691_v23, %s1220_s21 }
  0xf9   :  { %538 = vrot.lane.b32.xlu0 %v1703_v29, %s1219_s18 }
  0xfc   :  { %573 = vrot.lane.b32.xlu1 %v1695_v16, %s1220_s21 }
  0xfd   :  { %571 = vrot.lane.b32.xlu0 %v1697_v37, %s1220_s21 }
 0x100   :  { %606 = vrot.lane.b32.xlu1 %v1691_v23, %s1221_s24 }
 0x101   :  { %575 = vrot.lane.b32.xlu0 %v1703_v29, %s1220_s21 }
 0x104   :  { %610 = vrot.lane.b32.xlu1 %v1695_v16, %s1221_s24 }
 0x105   :  { %608 = vrot.lane.b32.xlu0 %v1697_v37, %s1221_s24 }
 0x108   :  { %643 = vrot.lane.b32.xlu1 %v1691_v23, %s1222_s27 }
 0x109   :  { %612 = vrot.lane.b32.xlu0 %v1703_v29, %s1221_s24 }
 0x10c   :  { %647 = vrot.lane.b32.xlu1 %v1695_v16, %s1222_s27 }
 0x10d   :  { %645 = vrot.lane.b32.xlu0 %v1697_v37, %s1222_s27 }
 0x110   :  { %680 = vrot.lane.b32.xlu1 %v1691_v23, %s1223_s30 }
 0x111   :  { %649 = vrot.lane.b32.xlu0 %v1703_v29, %s1222_s27 }
 0x114   :  { %684 = vrot.lane.b32.xlu1 %v1695_v16, %s1223_s30 }
 0x115   :  { %682 = vrot.lane.b32.xlu0 %v1697_v37, %s1223_s30 }
 0x118   :  { %717 = vrot.lane.b32.xlu1 %v1691_v23, %s1224_s12 }
 0x119   :  { %686 = vrot.lane.b32.xlu0 %v1703_v29, %s1223_s30 }
 0x11c   :  { %721 = vrot.lane.b32.xlu1 %v1695_v16, %s1224_s12 }
 0x11d   :  { %719 = vrot.lane.b32.xlu0 %v1697_v37, %s1224_s12 }
 0x120   :  { %831 = vperm.xlu1 %1173, %v828_v21   ;;  %v1823_v21 = vrot.slane %v549_v62, %v1399_v42 }
 0x121   :  { %723 = vrot.lane.b32.xlu0 %v1703_v29, %s1224_s12 }
 0x124   :  { %889 = vperm.xlu1 %1173, %v1152_v19   ;;  %v1826_v19 = vrot.slane %v586_v43, %v1397_v41 }
 0x125   :  { %858 = vperm.xlu0 %1172, %v1151_v0   ;;  %v1829_v0 = vrot.slane %v586_v43, %v1399_v42 }
 0x128   :  { %935 = vperm.xlu1 %1173, %v1154_v3  }
 0x129   :  { %920 = vperm.xlu0 %1172, %v1153_v4  }
 0x12c   :  { %997 = vperm.xlu1 %1173, %v1156_v45   ;;  %v1836_v45 = vrot.slane %v623_v40, %v1397_v41 }
 0x12d   :  { %966 = vperm.xlu0 %1172, %v1155_v51   ;;  %v660_v51 = vmul.f32 1e+30, %v1148_v44 }
 0x130   :  { %1059 = vperm.xlu1 %1173, %v1158_v27   ;;  %v2252_v27 = vld [vmem:[#allocation6_spill] sm:$0xff] }
 0x131   :  { %1028 = vperm.xlu0 %1172, %v1157_v25  }
 0x152   :  { %v459_v26 = vpop.permute.xlu1 %458 }
 0x156   :  { %v463_v49 = vpop.permute.xlu1 %462 }
 0x157   :  { %v461_v24 = vpop.permute.xlu0 %460  ;;  %v466_v59 = vsel %vm51_vm0, %v459_v26, %v463_v49  ;;  %v468_v17 = vsel %vm51_vm0, %v463_v49, %v459_v26  ;;  %v2253_v26 = vld [vmem:[#allocation7_spill] sm:$0xff] }
 0x158   :  { %v470_v25 = vmul.f32 %v468_v17, %v2252_v27  ;;  %v471_v49 = vmul.f32 %v466_v59, %v2253_v26  ;;  %v2256_v17 = vld [vmem:[#allocation9_spill] sm:$0xff] }
 0x15a   :  { %v496_v28 = vpop.permute.xlu1 %495  ;;  %v487_v61 = vadd.f32 %v480_v14, %v470_v25  ;;  %v1876_v25 = vrot.slane %v697_v56, %v1399_v42 }
 0x15b   :  { %v465_v9 = vpop.permute.xlu0 %464 }
 0x15c   :  { %v467_v3 = vsel %vm51_vm0, %v461_v24, %v465_v9  ;;  %v469_v4 = vsel %vm51_vm0, %v465_v9, %v461_v24 }
 0x15d   :  { %v472_v62 = vmul.f32 %v469_v4, %v2252_v27  ;;  %v473_v43 = vmul.f32 %v467_v3, %v2253_v26  ;;  %v488_v4 = vadd.f32 %v484_v15, %v471_v49  ;;  %v734_v49 = vmul.f32 1e+30, %v1150_v7 }
 0x15e   :  { %v500_v48 = vpop.permute.xlu1 %499 }
 0x15f   :  { %v498_v2 = vpop.permute.xlu0 %497  ;;  %v503_v31 = vsel %vm90_vm1, %v496_v28, %v500_v48  ;;  %v505_v18 = vsel %vm90_vm1, %v500_v48, %v496_v28  ;;  %v2255_v48 = vld [vmem:[#allocation8_spill] sm:$0xff]  ;;  %v489_v55 = vadd.f32 %v480_v14, %v472_v62  ;;  %v490_v38 = vadd.f32 %v484_v15, %v473_v43 }
 0x160   :  { %v507_v59 = vmul.f32 %v505_v18, %v2255_v48  ;;  %v508_v60 = vmul.f32 %v503_v31, %v2256_v17  ;;  %v1870_v31 = vrot.slane %v660_v51, %v1399_v42  ;;  %v492_v14 = vmax.f32 %v1695_v16, %v488_v4 }
 0x162   :  { %v533_v34 = vpop.permute.xlu1 %532 }
 0x163   :  { %v502_v53 = vpop.permute.xlu0 %501 }
 0x164   :  { %v504_v39 = vsel %vm90_vm1, %v498_v2, %v502_v53  ;;  %v506_v24 = vsel %vm90_vm1, %v502_v53, %v498_v2  ;;  %v1860_v2 = vrot.slane %v623_v40, %v1399_v42  ;;  %v1863_v53 = vrot.slane %v660_v51, %v1397_v41 }
 0x165   :  { %v509_v3 = vmul.f32 %v506_v24, %v2255_v48  ;;  %v510_v20 = vmul.f32 %v504_v39, %v2256_v17  ;;  %v1873_v40 = vrot.slane %v697_v56, %v1397_v41  ;;  %v524_v24 = vadd.f32 %v517_v47, %v507_v59 }
 0x166   :  { %v537_v57 = vpop.permute.xlu1 %536  ;;  %v525_v39 = vadd.f32 %v521_v6, %v508_v60  ;;  %v494_v60 = vmax.f32 %v1703_v29, %v490_v38 }
 0x167   :  { %v1790_v35 = vpop.permute.xlu0 %534  ;;  %v540_v44 = vsel %vm135_vm2, %v533_v34, %v537_v57  ;;  %v542_v28 = vsel %vm135_vm2, %v537_v57, %v533_v34  ;;  %v2257_v34 = vld [vmem:[#allocation10_spill] sm:$0xff]  ;;  %v526_v15 = vadd.f32 %v517_v47, %v509_v3  ;;  %v527_v56 = vadd.f32 %v521_v6, %v510_v20 }
 0x168   :  { %v544_v27 = vmul.f32 %v542_v28, %v1452_v58  ;;  %v545_v57 = vmul.f32 %v540_v44, %v2257_v34  ;;  %v491_v28 = vmax.f32 %v1691_v23, %v487_v61  ;;  %v1901_v47 = vrot.slane %v734_v49, %v1397_v41 }
 0x169   :  { %v1904_v6 = vrot.slane %v734_v49, %v1399_v42  ;;  %v529_v4 = vmax.f32 %v492_v14, %v525_v39 }
 0x16a   :  { %v1794_v54 = vpop.permute.xlu1 %569  ;;  %v561_v7 = vadd.f32 %v1820_v8, %v544_v27  ;;  %v562_v43 = vadd.f32 %v1823_v21, %v545_v57  ;;  %v493_v27 = vmax.f32 %v1697_v37, %v489_v55  ;;  %v528_v61 = vmax.f32 %v491_v28, %v524_v24 }
 0x16b   :  { %v1796_v30 = vpop.permute.xlu0 %538  ;;  %v1918_v55 = vmax.f32 %v494_v60, %v527_v56 }
 0x16c   :  { %v541_v44 = vsel %vm135_vm2, %v1790_v35, %v1796_v30  ;;  %v543_v51 = vsel %vm135_vm2, %v1796_v30, %v1790_v35  ;;  %v1916_v57 = vmax.f32 %v493_v27, %v526_v15  ;;  %v565_v38 = vmax.f32 %v528_v61, %v561_v7 }
 0x16d   :  { %v546_v16 = vmul.f32 %v543_v51, %v1452_v58  ;;  %v547_v30 = vmul.f32 %v541_v44, %v2257_v34  ;;  %v566_v37 = vmax.f32 %v529_v4, %v562_v43 }
 0x16e   :  { %v1801_v50 = vpop.permute.xlu1 %573 }
 0x16f   :  { %v1803_v5 = vpop.permute.xlu0 %571  ;;  %v577_v59 = vsel %vm180_vm3, %v1794_v54, %v1801_v50  ;;  %v579_v35 = vsel %vm180_vm3, %v1801_v50, %v1794_v54  ;;  %v563_v49 = vadd.f32 %v1820_v8, %v546_v16  ;;  %v564_v24 = vadd.f32 %v1823_v21, %v547_v30 }
 0x170   :  { %v581_v3 = vmul.f32 %v579_v35, %v1473_v63  ;;  %v582_v54 = vmul.f32 %v577_v59, %v1477_v1 }
 0x171   :  { %v567_v43 = vmax.f32 %v1916_v57, %v563_v49  ;;  %v568_v59 = vmax.f32 %v1918_v55, %v564_v24 }
 0x172   :  { %v1809_v52 = vpop.permute.xlu1 %606  ;;  %v598_v21 = vadd.f32 %v1826_v19, %v581_v3  ;;  %v599_v28 = vadd.f32 %v1829_v0, %v582_v54 }
 0x173   :  { %v1816_v46 = vpop.permute.xlu0 %575 }
 0x174   :  { %v578_v39 = vsel %vm180_vm3, %v1803_v5, %v1816_v46 }
 0x175   :  { %v584_v56 = vmul.f32 %v578_v39, %v1477_v1 }
 0x176   :  { %v611_v33 = vpop.permute.xlu1 %610 }
 0x177   :  { %v1848_v9 = vpop.permute.xlu0 %608  ;;  %v614_v50 = vsel %vm251_vm4, %v1809_v52, %v611_v33  ;;  %v616_v20 = vsel %vm251_vm4, %v611_v33, %v1809_v52  ;;  %v580_v52 = vsel %vm180_vm3, %v1816_v46, %v1803_v5  ;;  %v601_v57 = vadd.f32 %v1829_v0, %v584_v56  ;;  %v2259_v56 = vld [vmem:[#allocation14_spill] sm:$0xff] }
 0x178   :  { %v618_v33 = vmul.f32 %v614_v50, %v1498_v10  ;;  %v619_v44 = vmul.f32 %v616_v20, %v1502_v11  ;;  %v583_v15 = vmul.f32 %v580_v52, %v1473_v63  ;;  %v602_v50 = vmax.f32 %v565_v38, %v598_v21 }
 0x179   :  { %v603_v20 = vmax.f32 %v566_v37, %v599_v28 }
 0x17a   :  { %v644_v26 = vpop.permute.xlu1 %643  ;;  %v636_v16 = vadd.f32 %v1860_v2, %v619_v44 }
 0x17b   :  { %v613_v18 = vpop.permute.xlu0 %612 }
 0x17c   :  { %v615_v14 = vsel %vm251_vm4, %v1848_v9, %v613_v18  ;;  %v617_v5 = vsel %vm251_vm4, %v613_v18, %v1848_v9  ;;  %v635_v18 = vadd.f32 %v1836_v45, %v618_v33  ;;  %v640_v52 = vmax.f32 %v603_v20, %v636_v16 }
 0x17d   :  { %v620_v30 = vmul.f32 %v615_v14, %v1498_v10  ;;  %v621_v27 = vmul.f32 %v617_v5, %v1502_v11 }
 0x17e   :  { %v648_v62 = vpop.permute.xlu1 %647 }
 0x17f   :  { %v646_v23 = vpop.permute.xlu0 %645  ;;  %v651_v51 = vsel %vm296_vm5, %v644_v26, %v648_v62  ;;  %v653_v8 = vsel %vm296_vm5, %v648_v62, %v644_v26  ;;  %v638_v0 = vadd.f32 %v1860_v2, %v621_v27 }
 0x180   :  { %v655_v35 = vmul.f32 %v651_v51, %v1506_v12  ;;  %v656_v9 = vmul.f32 %v653_v8, %v1510_v13 }
 0x182   :  { %v681_v42 = vpop.permute.xlu1 %680  ;;  %v672_v49 = vadd.f32 %v1863_v53, %v655_v35  ;;  %v673_v24 = vadd.f32 %v1870_v31, %v656_v9 }
 0x183   :  { %v650_v29 = vpop.permute.xlu0 %649 }
 0x184   :  { %v652_v60 = vsel %vm296_vm5, %v646_v23, %v650_v29  ;;  %v654_v61 = vsel %vm296_vm5, %v650_v29, %v646_v23  ;;  %v639_v29 = vmax.f32 %v602_v50, %v635_v18 }
 0x185   :  { %v657_v38 = vmul.f32 %v652_v60, %v1506_v12  ;;  %v658_v37 = vmul.f32 %v654_v61, %v1510_v13 }
 0x186   :  { %v685_v46 = vpop.permute.xlu1 %684 }
 0x187   :  { %v688_v26 = vsel %vm341_vm6, %v681_v42, %v685_v46  ;;  %v690_v62 = vsel %vm341_vm6, %v685_v46, %v681_v42  ;;  %v683_v7 = vpop.permute.xlu0 %682  ;;  %v600_v42 = vadd.f32 %v1826_v19, %v583_v15  ;;  %v637_v19 = vadd.f32 %v1836_v45, %v620_v30  ;;  %v2258_v15 = vld [vmem:[#allocation13_spill] sm:$0xff] }
 0x188   :  { %v692_v4 = vmul.f32 %v688_v26, %v1520_v22  ;;  %v693_v3 = vmul.f32 %v690_v62, %v1524_v32  ;;  %v676_v46 = vmax.f32 %v639_v29, %v672_v49  ;;  %v677_v45 = vmax.f32 %v640_v52, %v673_v24 }
 0x189   :  { %v604_v62 = vmax.f32 %v567_v43, %v600_v42  ;;  %v674_v35 = vadd.f32 %v1863_v53, %v657_v38  ;;  %v675_v9 = vadd.f32 %v1870_v31, %v658_v37 }
 0x18a   :  { %v718_v54 = vpop.permute.xlu1 %717  ;;  %v709_v33 = vadd.f32 %v1873_v40, %v692_v4  ;;  %v710_v44 = vadd.f32 %v1876_v25, %v693_v3 }
 0x18b   :  { %v687_v55 = vpop.permute.xlu0 %686  ;;  %v641_v60 = vmax.f32 %v604_v62, %v637_v19 }
 0x18c   :  { %v689_v39 = vsel %vm341_vm6, %v683_v7, %v687_v55  ;;  %v691_v23 = vsel %vm341_vm6, %v687_v55, %v683_v7  ;;  %v605_v7 = vmax.f32 %v568_v59, %v601_v57  ;;  %v713_v18 = vmax.f32 %v676_v46, %v709_v33 }
 0x18d   :  { %v694_v8 = vmul.f32 %v689_v39, %v1520_v22  ;;  %v695_v21 = vmul.f32 %v691_v23, %v1524_v32  ;;  %v714_v16 = vmax.f32 %v677_v45, %v710_v44  ;;  %v678_v59 = vmax.f32 %v641_v60, %v674_v35 }
 0x18e   :  { %v722_v51 = vpop.permute.xlu1 %721  ;;  %v642_v61 = vmax.f32 %v605_v7, %v638_v0 }
 0x18f   :  { %v725_v28 = vsel %vm386_vm7, %v718_v54, %v722_v51  ;;  %v727_v14 = vsel %vm386_vm7, %v722_v51, %v718_v54  ;;  %v720_v5 = vpop.permute.xlu0 %719  ;;  %v711_v4 = vadd.f32 %v1873_v40, %v694_v8  ;;  %v712_v3 = vadd.f32 %v1876_v25, %v695_v21 }
 0x190   :  { %v729_v2 = vmul.f32 %v725_v28, %v2258_v15  ;;  %v730_v26 = vmul.f32 %v727_v14, %v2259_v56  ;;  %v679_v20 = vmax.f32 %v642_v61, %v675_v9 }
 0x191   :  { %v715_v25 = vmax.f32 %v678_v59, %v711_v4 }
 0x192   :  { %v746_v30 = vadd.f32 %v1901_v47, %v729_v2  ;;  %v747_v27 = vadd.f32 %v1904_v6, %v730_v26  ;;  %v716_v49 = vmax.f32 %v679_v20, %v712_v3 }
 0x193   :  { %v724_v54 = vpop.permute.xlu0 %723 }
 0x194   :  { %v750_v50 = vmax.f32 %v713_v18, %v746_v30  ;;  %v751_v43 = vmax.f32 %v714_v16, %v747_v27  ;;  %v726_v53 = vsel %vm386_vm7, %v720_v5, %v724_v54  ;;  %v728_v31 = vsel %vm386_vm7, %v724_v54, %v720_v5  ;;  %v33_v30 = vld [vmem:[%s2216_s1] sm:$0xff]  ;;  %v34_v54 = vld [vmem:[%s2216_s1 + $0x8] sm:$0xff] }
 0x195   :  { %v731_v42 = vmul.f32 %v726_v53, %v2258_v15  ;;  %v732_v57 = vmul.f32 %v728_v31, %v2259_v56  ;;  %v804_v61 = vcombine.high %v33_v30, %v33_v30  ;;  %v805_v31 = vcombine.high %v34_v54, %v34_v54 }
 0x196   :  { %vm754_vm9 = vcmp.ge.f32.partialorder %v750_v50, 0.0  ;;  %vm755_vm10 = vcmp.ge.f32.partialorder %v751_v43, 0.0  ;;  %v758_v40 = vmul.f32 0.2, %v750_v50  ;;  %v759_v55 = vmul.f32 0.2, %v751_v43 }
 0x197   :  { %v748_v24 = vadd.f32 %v1901_v47, %v731_v42  ;;  %v749_v39 = vadd.f32 %v1904_v6, %v732_v57 }
 0x198   :  { %v762_v23 = vsel %vm754_vm9, %v750_v50, %v758_v40  ;;  %v763_v29 = vsel %vm755_vm10, %v751_v43, %v759_v55 }
 0x199   :  { %v766_v52 = vsub.f32 0.0, %v762_v23  ;;  %v767_v38 = vsub.f32 0.0, %v763_v29  ;;  %v752_v37 = vmax.f32 %v715_v25, %v748_v24  ;;  %v753_v19 = vmax.f32 %v716_v49, %v749_v39  ;;  %v1070_v24 = vld [vmem:[%s2220_s5] sm:$0xf]  ;;  %s1226_s5 = smov [#allocation3]  }
 0x19b   :  { %v770_v0 = vmul.f32 1.442695, %v766_v52  ;;  %v772_v33 = vmul.f32 1.442695, %v767_v38  ;;  %vm756_vm11 = vcmp.ge.f32.partialorder %v752_v37, 0.0  ;;  %vm757_vm12 = vcmp.ge.f32.partialorder %v753_v19, 0.0  ;;  %v2000_v9 = vpop.permute.xlu1 %831 }
 0x19c   :  { %v760_v44 = vmul.f32 0.2, %v752_v37  ;;  %v761_v51 = vmul.f32 0.2, %v753_v19 }
 0x19d   :  { %1178 = vpow2.f32 %v770_v0 }
 0x19e   :  { %1180 = vpow2.f32 %v772_v33  ;;  %v764_v8 = vsel %vm756_vm11, %v752_v37, %v760_v44  ;;  %v765_v21 = vsel %vm757_vm12, %v753_v19, %v761_v51 }
 0x19f   :  { %v768_v28 = vsub.f32 0.0, %v764_v8  ;;  %v769_v47 = vsub.f32 0.0, %v765_v21  ;;  %v2002_v18 = vpop.permute.xlu1 %889 }
 0x1a0   :  { %v859_v39 = vpop.permute.xlu0 %858 }
 0x1a1   :  { %v774_v14 = vmul.f32 1.442695, %v768_v28  ;;  %v776_v6 = vmul.f32 1.442695, %v769_v47 }
 0x1a3   :  { %1182 = vpow2.f32 %v774_v14  ;;  %v2012_v50 = vpop.permute.xlu1 %935 }
 0x1a4   :  { %1184 = vpow2.f32 %v776_v6  ;;  %v2073_v23 = vpop.permute.xlu0 %920 }
 0x1a7   :  { %v2075_v29 = vpop.permute.xlu1 %997 }
 0x1a8   :  { %v2077_v52 = vpop.permute.xlu0 %966 }
 0x1aa   :  { %v1179_v5 = vpop.eup %1178 }
 0x1ab   :  { %v1181_v46 = vpop.eup %1180  ;;  %v778_v45 = vadd.f32 1.0, %v1179_v5  ;;  %v2079_v38 = vpop.permute.xlu1 %1059 }
 0x1ac   :  { %v779_v2 = vadd.f32 1.0, %v1181_v46  ;;  %v2081_v19 = vpop.permute.xlu0 %1028 }
 0x1ad   :  { %1186 = vrcp.f32 %v778_v45 }
 0x1ae   :  { %1188 = vrcp.f32 %v779_v2  ;;  %v2260_v2 = vld [vmem:[#allocation6_spill] sm:$0xff] }
 0x1b0   :  { %v1183_v26 = vpop.eup %1182 }
 0x1b1   :  { %v1185_v62 = vpop.eup %1184  ;;  %v780_v7 = vadd.f32 1.0, %v1183_v26 }
 0x1b2   :  { %v781_v35 = vadd.f32 1.0, %v1185_v62  ;;  %v2261_v62 = vld [vmem:[#allocation7_spill] sm:$0xff] }
 0x1b3   :  { %1190 = vrcp.f32 %v780_v7 }
 0x1b4   :  { %1192 = vrcp.f32 %v781_v35 }
 0x1ba   :  { %v1187_v16 = vpop.eup %1186 }
 0x1bb   :  { %v1189_v27 = vpop.eup %1188  ;;  %v789_v60 = vrot.slane %v1187_v16, %v1397_v41 }
 0x1bc   :  { %v793_v4 = vrot.slane %v1189_v27, %v1397_v41 }
 0x1bd   :  { %v808_v3 = vmul.f32 %v789_v60, %v33_v30 }
 0x1be   :  { %v2018_v20 = vmul.f32 %v804_v61, %v793_v4 }
 0x1bf   :  { %v2015_v43 = vmul.f32 %v2012_v50, %v808_v3  ;;  %812 = vrot.lane.b32.xlu1 %v808_v3, %s1217_s9 }
 0x1c0   :  { %v1191_v53 = vpop.eup %1190 }
 0x1c1   :  { %v1193_v59 = vpop.eup %1192  ;;  %v797_v42 = vrot.slane %v1191_v53, %v1397_v41 }
 0x1c2   :  { %v801_v57 = vrot.slane %v1193_v59, %v1397_v41  ;;  %v1080_v41 = vld [vmem:[%s2221_s6] sm:$0xf]  ;;  %s1117_s6 = sshll.u32 %s1226_s5, 4  ;;  %s1118_s6 = int_to_ptr.vmem [resolvable:$true] %s1117_s6 }
 0x1c3   :  { %v810_v40 = vmul.f32 %v797_v42, %v34_v54  ;;  %816 = vrot.lane.b32.xlu1 %v2018_v20, %s1217_s9  ;;  %p1199_p1 = scmp.lt.s32.totalorder %s1118_s6, %s1118_s6 }
 0x1c4   :  { %v811_v55 = vmul.f32 %v805_v31, %v801_v57 }
 0x1c5   :  { %v2025_v25 = vmul.f32 %v2012_v50, %v810_v40  ;;  %814 = vrot.lane.b32.xlu0 %v810_v40, %s1217_s9 }
 0x1c6   :  { %v2029_v49 = vmul.f32 %v2012_v50, %v811_v55 }
 0x1c7   :  { %840 = vrot.lane.b32.xlu1 %v810_v40, %s1218_s0 }
 0x1c9   :  { %818 = vrot.lane.b32.xlu0 %v811_v55, %s1217_s9 }
 0x1cb   :  { %844 = vrot.lane.b32.xlu1 %v811_v55, %s1218_s0 }
 0x1cd   :  { %838 = vrot.lane.b32.xlu0 %v808_v3, %s1218_s0 }
 0x1cf   :  { %871 = vrot.lane.b32.xlu1 %v810_v40, %s1219_s18 }
 0x1d1   :  { %842 = vrot.lane.b32.xlu0 %v2018_v20, %s1218_s0 }
 0x1d3   :  { %875 = vrot.lane.b32.xlu1 %v811_v55, %s1219_s18 }
 0x1d5   :  { %869 = vrot.lane.b32.xlu0 %v808_v3, %s1219_s18 }
 0x1d7   :  { %900 = vrot.lane.b32.xlu1 %v808_v3, %s1220_s21 }
 0x1d9   :  { %873 = vrot.lane.b32.xlu0 %v2018_v20, %s1219_s18 }
 0x1db   :  { %904 = vrot.lane.b32.xlu1 %v2018_v20, %s1220_s21 }
 0x1dd   :  { %902 = vrot.lane.b32.xlu0 %v810_v40, %s1220_s21 }
 0x1df   :  { %946 = vrot.lane.b32.xlu1 %v808_v3, %s1221_s24 }
 0x1e1   :  { %906 = vrot.lane.b32.xlu0 %v811_v55, %s1220_s21  ;;  %s1194_s21 = scalar_lea.vmem %s1118_s6, 256 }
 0x1e2   :  { %p1195_p0 = scmp.ne.s32.totalorder %s1118_s6, %s1194_s21  ;;  %p1200_p2 = scmp.lt.s32.totalorder %s1194_s21, %s1194_s21 }
 0x1e3   :  { %950 = vrot.lane.b32.xlu1 %v2018_v20, %s1221_s24 }
 0x1e4   :  { %p1201_p3 = por %p1200_p2, %p1199_p1 }
 0x1e5   :  { %948 = vrot.lane.b32.xlu0 %v810_v40, %s1221_s24 }
 0x1e6   :  { %p1202_p4 = pnand %p1201_p3, %p1195_p0 }
 0x1e7   :  { %979 = vrot.lane.b32.xlu1 %v810_v40, %s1222_s27 }
 0x1e9   :  { %952 = vrot.lane.b32.xlu0 %v811_v55, %s1221_s24 }
 0x1eb   :  { %983 = vrot.lane.b32.xlu1 %v811_v55, %s1222_s27 }
 0x1ed   :  { %977 = vrot.lane.b32.xlu0 %v808_v3, %s1222_s27 }
 0x1ef   :  { %1008 = vrot.lane.b32.xlu1 %v808_v3, %s1223_s30 }
 0x1f1   :  { %981 = vrot.lane.b32.xlu0 %v2018_v20, %s1222_s27 }
 0x1f3   :  { %1012 = vrot.lane.b32.xlu1 %v2018_v20, %s1223_s30 }
 0x1f5   :  { %1010 = vrot.lane.b32.xlu0 %v810_v40, %s1223_s30 }
 0x1f7   :  { %1041 = vrot.lane.b32.xlu1 %v810_v40, %s1224_s12 }
 0x1f9   :  { %1014 = vrot.lane.b32.xlu0 %v811_v55, %s1223_s30 }
 0x1fb   :  { %1045 = vrot.lane.b32.xlu1 %v811_v55, %s1224_s12 }
 0x1fd   :  { %1039 = vrot.lane.b32.xlu0 %v808_v3, %s1224_s12 }
 0x1ff   :  { %1083 = vperm.xlu1 %1173, %v1080_v41  }
 0x201   :  { %1043 = vrot.lane.b32.xlu0 %v2018_v20, %s1224_s12 }
 0x205   :  { %1073 = vperm.xlu0 %1172, %v1070_v24  }
 0x231   :  { %v813_v37 = vpop.permute.xlu1 %812 }
 0x235   :  { %v817_v0 = vpop.permute.xlu1 %816 }
 0x236   :  { %v820_v27 = vsel %vm51_vm0, %v813_v37, %v817_v0  ;;  %v822_v60 = vsel %vm51_vm0, %v817_v0, %v813_v37 }
 0x237   :  { %v815_v33 = vpop.permute.xlu0 %814  ;;  %v824_v24 = vmul.f32 %v822_v60, %v2260_v2 }
 0x239   :  { %v841_v44 = vpop.permute.xlu1 %840 }
 0x23b   :  { %v819_v51 = vpop.permute.xlu0 %818 }
 0x23c   :  { %v821_v14 = vsel %vm51_vm0, %v815_v33, %v819_v51  ;;  %v823_v6 = vsel %vm51_vm0, %v819_v51, %v815_v33 }
 0x23d   :  { %v845_v8 = vpop.permute.xlu1 %844  ;;  %v826_v26 = vmul.f32 %v823_v6, %v2260_v2  ;;  %v827_v7 = vmul.f32 %v821_v14, %v2261_v62  ;;  %v834_v14 = vmul.f32 %v2000_v9, %v824_v24 }
 0x23e   :  { %v847_v21 = vsel %vm90_vm1, %v841_v44, %v845_v8  ;;  %v849_v28 = vsel %vm90_vm1, %v845_v8, %v841_v44 }
 0x23f   :  { %v839_v47 = vpop.permute.xlu0 %838  ;;  %v852_v5 = vmul.f32 %v849_v28, %v2255_v48  ;;  %v853_v46 = vmul.f32 %v847_v21, %v2256_v17  ;;  %v836_v42 = vmul.f32 %v2000_v9, %v826_v26  ;;  %v837_v57 = vmul.f32 %v2000_v9, %v827_v7 }
 0x241   :  { %v872_v45 = vpop.permute.xlu1 %871  ;;  %v863_v61 = vmul.f32 %v859_v39, %v852_v5  ;;  %v864_v4 = vmul.f32 %v859_v39, %v853_v46 }
 0x243   :  { %v843_v35 = vpop.permute.xlu0 %842  ;;  %v868_v37 = vadd.f32 %v864_v4, %v837_v57 }
 0x244   :  { %v846_v16 = vsel %vm90_vm1, %v839_v47, %v843_v35  ;;  %v848_v30 = vsel %vm90_vm1, %v843_v35, %v839_v47 }
 0x245   :  { %v876_v3 = vpop.permute.xlu1 %875  ;;  %v850_v54 = vmul.f32 %v848_v30, %v2255_v48  ;;  %v851_v53 = vmul.f32 %v846_v16, %v2256_v17  ;;  %v825_v48 = vmul.f32 %v820_v27, %v2261_v62  ;;  %v867_v17 = vadd.f32 %v863_v61, %v836_v42 }
 0x246   :  { %v878_v31 = vsel %vm135_vm2, %v872_v45, %v876_v3  ;;  %v880_v59 = vsel %vm135_vm2, %v876_v3, %v872_v45 }
 0x247   :  { %v883_v40 = vmul.f32 %v880_v59, %v1452_v58  ;;  %v884_v55 = vmul.f32 %v878_v31, %v2257_v34  ;;  %v870_v41 = vpop.permute.xlu0 %869  ;;  %v861_v51 = vmul.f32 %v859_v39, %v850_v54  ;;  %v862_v8 = vmul.f32 %v859_v39, %v851_v53 }
 0x248   :  { %v835_v6 = vmul.f32 %v2000_v9, %v825_v48  ;;  %v939_v54 = vmul.f32 %v2012_v50, %v2018_v20 }
 0x249   :  { %v894_v0 = vmul.f32 %v2002_v18, %v883_v40  ;;  %v895_v33 = vmul.f32 %v2002_v18, %v884_v55  ;;  %v901_v44 = vpop.permute.xlu1 %900  ;;  %v865_v62 = vadd.f32 %v861_v51, %v834_v14 }
 0x24a   :  { %v866_v39 = vadd.f32 %v862_v8, %v835_v6 }
 0x24b   :  { %v898_v21 = vadd.f32 %v894_v0, %v867_v17  ;;  %v899_v28 = vadd.f32 %v895_v33, %v868_v37  ;;  %v874_v47 = vpop.permute.xlu0 %873 }
 0x24c   :  { %v877_v5 = vsel %vm135_vm2, %v870_v41, %v874_v47  ;;  %v879_v46 = vsel %vm135_vm2, %v874_v47, %v870_v41 }
 0x24d   :  { %v881_v45 = vmul.f32 %v879_v46, %v1452_v58  ;;  %v882_v2 = vmul.f32 %v877_v5, %v2257_v34  ;;  %v905_v26 = vpop.permute.xlu1 %904 }
 0x24e   :  { %v908_v7 = vsel %vm180_vm3, %v901_v44, %v905_v26  ;;  %v910_v35 = vsel %vm180_vm3, %v905_v26, %v901_v44 }
 0x24f   :  { %v892_v9 = vmul.f32 %v2002_v18, %v881_v45  ;;  %v893_v16 = vmul.f32 %v2002_v18, %v882_v2  ;;  %v912_v30 = vmul.f32 %v910_v35, %v1473_v63  ;;  %v913_v27 = vmul.f32 %v908_v7, %v1477_v1  ;;  %v903_v58 = vpop.permute.xlu0 %902 }
 0x251   :  { %v896_v60 = vadd.f32 %v892_v9, %v865_v62  ;;  %v897_v34 = vadd.f32 %v893_v16, %v866_v39  ;;  %v923_v61 = vmul.f32 %v2073_v23, %v912_v30  ;;  %v924_v4 = vmul.f32 %v2073_v23, %v913_v27  ;;  %v947_v3 = vpop.permute.xlu1 %946 }
 0x253   :  { %v927_v53 = vadd.f32 %v923_v61, %v896_v60  ;;  %v928_v31 = vadd.f32 %v924_v4, %v897_v34  ;;  %v907_v59 = vpop.permute.xlu0 %906 }
 0x254   :  { %v909_v18 = vsel %vm180_vm3, %v903_v58, %v907_v59  ;;  %v911_v42 = vsel %vm180_vm3, %v907_v59, %v903_v58 }
 0x255   :  { %v914_v57 = vmul.f32 %v911_v42, %v1473_v63  ;;  %v915_v40 = vmul.f32 %v909_v18, %v1477_v1  ;;  %v951_v55 = vpop.permute.xlu1 %950  ;;  %v942_v41 = vadd.f32 %v2015_v43, %v927_v53  ;;  %v943_v24 = vadd.f32 %v939_v54, %v928_v31 }
 0x256   :  { %v954_v50 = vsel %vm251_vm4, %v947_v3, %v951_v55  ;;  %v956_v20 = vsel %vm251_vm4, %v951_v55, %v947_v3 }
 0x257   :  { %v925_v48 = vmul.f32 %v2073_v23, %v914_v57  ;;  %v926_v17 = vmul.f32 %v2073_v23, %v915_v40  ;;  %v958_v37 = vmul.f32 %v954_v50, %v1498_v10  ;;  %v959_v63 = vmul.f32 %v956_v20, %v1502_v11  ;;  %v949_v0 = vpop.permute.xlu0 %948 }
 0x259   :  { %v929_v1 = vadd.f32 %v925_v48, %v898_v21  ;;  %v930_v33 = vadd.f32 %v926_v17, %v899_v28  ;;  %v969_v43 = vmul.f32 %v2077_v52, %v958_v37  ;;  %v970_v44 = vmul.f32 %v2077_v52, %v959_v63  ;;  %v980_v51 = vpop.permute.xlu1 %979 }
 0x25b   :  { %v973_v8 = vadd.f32 %v969_v43, %v942_v41  ;;  %v974_v47 = vadd.f32 %v970_v44, %v943_v24  ;;  %v944_v14 = vadd.f32 %v2025_v25, %v929_v1  ;;  %v945_v6 = vadd.f32 %v2029_v49, %v930_v33  ;;  %v953_v5 = vpop.permute.xlu0 %952 }
 0x25c   :  { %v955_v23 = vsel %vm251_vm4, %v949_v0, %v953_v5  ;;  %v957_v46 = vsel %vm251_vm4, %v953_v5, %v949_v0 }
 0x25d   :  { %v960_v21 = vmul.f32 %v955_v23, %v1498_v10  ;;  %v961_v28 = vmul.f32 %v957_v46, %v1502_v11  ;;  %v984_v45 = vpop.permute.xlu1 %983 }
 0x25e   :  { %v986_v2 = vsel %vm296_vm5, %v980_v51, %v984_v45  ;;  %v988_v25 = vsel %vm296_vm5, %v984_v45, %v980_v51 }
 0x25f   :  { %v971_v49 = vmul.f32 %v2077_v52, %v960_v21  ;;  %v972_v26 = vmul.f32 %v2077_v52, %v961_v28  ;;  %v991_v62 = vmul.f32 %v986_v2, %v1506_v12  ;;  %v992_v39 = vmul.f32 %v988_v25, %v1510_v13  ;;  %v978_v7 = vpop.permute.xlu0 %977 }
 0x261   :  { %v975_v35 = vadd.f32 %v971_v49, %v944_v14  ;;  %v976_v10 = vadd.f32 %v972_v26, %v945_v6  ;;  %v1002_v11 = vmul.f32 %v2075_v29, %v991_v62  ;;  %v1003_v9 = vmul.f32 %v2075_v29, %v992_v39  ;;  %v1009_v16 = vpop.permute.xlu1 %1008 }
 0x263   :  { %v1006_v30 = vadd.f32 %v1002_v11, %v975_v35  ;;  %v1007_v27 = vadd.f32 %v1003_v9, %v976_v10  ;;  %v982_v58 = vpop.permute.xlu0 %981 }
 0x264   :  { %v985_v60 = vsel %vm296_vm5, %v978_v7, %v982_v58  ;;  %v987_v52 = vsel %vm296_vm5, %v982_v58, %v978_v7 }
 0x265   :  { %v989_v34 = vmul.f32 %v985_v60, %v1506_v12  ;;  %v990_v61 = vmul.f32 %v987_v52, %v1510_v13  ;;  %v1013_v4 = vpop.permute.xlu1 %1012 }
 0x266   :  { %v1016_v3 = vsel %vm341_vm6, %v1009_v16, %v1013_v4  ;;  %v1018_v54 = vsel %vm341_vm6, %v1013_v4, %v1009_v16 }
 0x267   :  { %v1000_v53 = vmul.f32 %v2075_v29, %v989_v34  ;;  %v1001_v31 = vmul.f32 %v2075_v29, %v990_v61  ;;  %v1020_v59 = vmul.f32 %v1016_v3, %v1520_v22  ;;  %v1021_v18 = vmul.f32 %v1018_v54, %v1524_v32  ;;  %v1011_v42 = vpop.permute.xlu0 %1010 }
 0x269   :  { %v1004_v57 = vadd.f32 %v1000_v53, %v973_v8  ;;  %v1005_v12 = vadd.f32 %v1001_v31, %v974_v47  ;;  %v1031_v13 = vmul.f32 %v2081_v19, %v1020_v59  ;;  %v1032_v40 = vmul.f32 %v2081_v19, %v1021_v18  ;;  %v1042_v55 = vpop.permute.xlu1 %1041 }
 0x26b   :  { %v1035_v41 = vadd.f32 %v1031_v13, %v1004_v57  ;;  %v1036_v24 = vadd.f32 %v1032_v40, %v1005_v12  ;;  %v1015_v50 = vpop.permute.xlu0 %1014 }
 0x26c   :  { %v1017_v20 = vsel %vm341_vm6, %v1011_v42, %v1015_v50  ;;  %v1019_v29 = vsel %vm341_vm6, %v1015_v50, %v1011_v42 }
 0x26d   :  { %v1022_v48 = vmul.f32 %v1017_v20, %v1520_v22  ;;  %v1023_v17 = vmul.f32 %v1019_v29, %v1524_v32  ;;  %v1046_v37 = vpop.permute.xlu1 %1045 }
 0x26e   :  { %v1048_v63 = vsel %vm386_vm7, %v1042_v55, %v1046_v37  ;;  %v1050_v0 = vsel %vm386_vm7, %v1046_v37, %v1042_v55 }
 0x26f   :  { %v1033_v1 = vmul.f32 %v2081_v19, %v1022_v48  ;;  %v1034_v33 = vmul.f32 %v2081_v19, %v1023_v17  ;;  %v1053_v43 = vmul.f32 %v1048_v63, %v2258_v15  ;;  %v1054_v44 = vmul.f32 %v1050_v0, %v2259_v56  ;;  %v1040_v51 = vpop.permute.xlu0 %1039 }
 0x271   :  { %v1037_v8 = vadd.f32 %v1033_v1, %v1006_v30  ;;  %v1038_v22 = vadd.f32 %v1034_v33, %v1007_v27  ;;  %v1064_v32 = vmul.f32 %v2079_v38, %v1053_v43  ;;  %v1065_v47 = vmul.f32 %v2079_v38, %v1054_v44 }
 0x273   :  { %v1044_v14 = vpop.permute.xlu0 %1043  ;;  %v1068_v6 = vadd.f32 %v1064_v32, %v1037_v8  ;;  %v1069_v5 = vadd.f32 %v1065_v47, %v1038_v22 }
 0x274   :  { %v1047_v23 = vsel %vm386_vm7, %v1040_v51, %v1044_v14  ;;  %v1049_v19 = vsel %vm386_vm7, %v1044_v14, %v1040_v51 }
 0x275   :  { %v1051_v46 = vmul.f32 %v1047_v23, %v2258_v15  ;;  %v1052_v21 = vmul.f32 %v1049_v19, %v2259_v56 }
 0x277   :  { %v1062_v28 = vmul.f32 %v2079_v38, %v1051_v46  ;;  %v1063_v45 = vmul.f32 %v2079_v38, %v1052_v21 }
 0x279   :  { %v1066_v2 = vadd.f32 %v1062_v28, %v1035_v41  ;;  %v1067_v25 = vadd.f32 %v1063_v45, %v1036_v24 }
 0x27a   :  { %v1084_v35 = vpop.permute.xlu1 %1083 }
 0x280   :  { %v1074_v49 = vpop.permute.xlu0 %1073 }
 0x281   :  { %v1076_v26 = vmul.f32 %v1074_v49, %v1066_v2  ;;  %v1077_v62 = vmul.f32 %v1074_v49, %v1067_v25  ;;  %v1078_v39 = vmul.f32 %v1074_v49, %v1068_v6  ;;  %v1079_v7 = vmul.f32 %v1074_v49, %v1069_v5 }
 0x283   :  { %v1086_v10 = vadd.f32 %v1084_v35, %v1076_v26  ;;  %v1087_v11 = vadd.f32 %v1084_v35, %v1077_v62  ;;  %v1088_v36 = vadd.f32 %v1084_v35, %v1078_v39  ;;  %v1089_v9 = vadd.f32 %v1084_v35, %v1079_v7 }
 0x285   :  { %vm1090_vm13 = vcmp.ge.f32.partialorder %v1086_v10, 0.0  ;;  %vm1091_vm14 = vcmp.ge.f32.partialorder %v1087_v11, 0.0  ;;  %vm1092_vm15 = vcmp.ge.f32.partialorder %v1088_v36, 0.0  ;;  %vm1093_vm0 = vcmp.ge.f32.partialorder %v1089_v9, 0.0 }
 0x286   :  { %v1094_v15 = vmul.f32 0.2, %v1086_v10  ;;  %v1095_v56 = vmul.f32 0.2, %v1087_v11  ;;  %v1096_v38 = vmul.f32 0.2, %v1088_v36 }
 0x287   :  { %v1097_v16 = vmul.f32 0.2, %v1089_v9 }
 0x288   :  { %v1098_v30 = vsel %vm1090_vm13, %v1086_v10, %v1094_v15  ;;  %v1099_v27 = vsel %vm1091_vm14, %v1087_v11, %v1095_v56  ;;  %v1100_v58 = vsel %vm1092_vm15, %v1088_v36, %v1096_v38 }
 0x289   :  { %v1101_v60 = vsel %vm1093_vm0, %v1089_v9, %v1097_v16  ;;  %v1106_v52 = vcombine.low %v1098_v30, %v1099_v27 }
 0x28a   :  { %v1107_v34 = vcombine.low %v1100_v58, %v1101_v60 }
 0x28b   :  { %1110 = vst [vmem:[#allocation3] sm:$0xff] %v1106_v52 }
 0x28c   :  { %1111 = vst [vmem:[#allocation3 + $0x8] sm:$0xff] %v1107_v34 }
 0x28d   :  { %1205 = shalt.err (!%p1202_p4)
}
 0x28e   :  { %s1227_s24 = smov 128   ;;  %s1228_s27 = smov 8  }
 0x28f   :  { %1123 = dma.vmem_to_hbm [thread:$0]  %s1118_s6, 256, %s2223_s8, [#allocation4], %s1227_s24, %s1227_s24, %s1228_s27  }
 0x290   :  { %1214 = dma.done.wait [#allocation4], 256  }
 0x291   :  { %1215 = vsyncadd [#allocation4], 4294967040 }
 0x292   :  { %1127 = vsyncpa [#allocation4], 1 }

</bundles_post_ra>
